<compile_context>
chip_gen: v5e
topology: v5e:2x2
jax: 0.10.0
libtpu: 0.0.40
codegen_flags: <defaults>
</compile_context>

<pallas_src>
import jax
import jax.numpy as jnp
from jax.experimental import pallas as pl
from jax.experimental.pallas import tpu as pltpu


# Set to jnp.bfloat16 on v6e/v7x to halve weight/activation streaming into the
# MXU (accumulation stays f32 via preferred_element_type).  float32 keeps exact
# parity with the PyTorch module.
MXU_DTYPE = jnp.float32


def _dot(a, b):
    return jnp.dot(a.astype(MXU_DTYPE), b.astype(MXU_DTYPE),
                   preferred_element_type=jnp.float32)


def _lstm_gates(gates, c_prev, H):
    # Gate order i, f, g, o matches torch.nn.LSTM.
    # NOTE: with production H a multiple of 128 these slices are whole lane tiles.
    i = jax.nn.sigmoid(gates[:, 0 * H:1 * H])
    f = jax.nn.sigmoid(gates[:, 1 * H:2 * H])
    g = jnp.tanh(gates[:, 2 * H:3 * H])
    o = jax.nn.sigmoid(gates[:, 3 * H:4 * H])
    c_new = f * c_prev + i * g
    h_new = o * jnp.tanh(c_new)
    return h_new, c_new


# ----------------------------------------------------------------------------
# Encoder: fused bidirectional time-loop LSTM kernel (one pallas_call per layer)
# ----------------------------------------------------------------------------

def make_encoder_layer_kernel(seq_len, He):
    def kernel(x_ref, len_ref,
               wih_f_ref, whh_f_ref, b_f_ref,
               wih_b_ref, whh_b_ref, b_b_ref,
               y_ref, hfin_ref, cfin_ref,
               hf_sc, cf_sc, hb_sc, cb_sc):
        sp = pl.program_id(0)

        @pl.when(sp == 0)
        def _():
            hf_sc[...] = jnp.zeros_like(hf_sc)
            cf_sc[...] = jnp.zeros_like(cf_sc)
            hb_sc[...] = jnp.zeros_like(hb_sc)
            cb_sc[...] = jnp.zeros_like(cb_sc)

        t_f = sp                         # forward time index
        t_b = seq_len - 1 - sp           # backward time index
        lens = len_ref[...]              # [B, 1] int32 (resident)

        # ---- forward direction -------------------------------------------------
        x_f = x_ref[t_f]                                  # [B, Din]
        h = hf_sc[...]
        c = cf_sc[...]
        gates = _dot(x_f, wih_f_ref[...]) + _dot(h, whh_f_ref[...]) + b_f_ref[...]
        h_new, c_new = _lstm_gates(gates, c, He)
        valid = lens > t_f                                # [B, 1] bool
        hf_sc[...] = jnp.where(valid, h_new, h)           # freeze past length
        cf_sc[...] = jnp.where(valid, c_new, c)
        y_ref[t_f, :, 0:He] = jnp.where(valid, h_new, 0.0)

        # ---- backward direction ------------------------------------------------
        x_b = x_ref[t_b]                                  # [B, Din]
        h = hb_sc[...]
        c = cb_sc[...]
        gates = _dot(x_b, wih_b_ref[...]) + _dot(h, whh_b_ref[...]) + b_b_ref[...]
        h_new, c_new = _lstm_gates(gates, c, He)
        valid = lens > t_b                                # [B, 1] bool
        hb_sc[...] = jnp.where(valid, h_new, h)
        cb_sc[...] = jnp.where(valid, c_new, c)
        y_ref[t_b, :, He:2 * He] = jnp.where(valid, h_new, 0.0)

        # ---- finals (fwd|bwd concatenated), written once at the last step -------
        @pl.when(sp == seq_len - 1)
        def _():
            hfin_ref[:, 0:He] = hf_sc[...]
            hfin_ref[:, He:2 * He] = hb_sc[...]
            cfin_ref[:, 0:He] = cf_sc[...]
            cfin_ref[:, He:2 * He] = cb_sc[...]

    return kernel


def _encoder_layer(x_tm, len2d, layer_p):
    S, B, Din = x_tm.shape
    p_f, p_b = layer_p['fwd'], layer_p['bwd']
    He = p_f['w_hh_T'].shape[0]
    const2 = lambda s: (0, 0)
    const3 = lambda s: (0, 0, 0)

    y, h_fin, c_fin = pl.pallas_call(
        make_encoder_layer_kernel(S, He),
        grid=(S,),
        in_specs=[
            pl.BlockSpec((S, B, Din), const3),        # x (resident, read once)
            pl.BlockSpec((B, 1), const2),             # lengths (resident)
            pl.BlockSpec((Din, 4 * He), const2),      # fwd W_ih^T
            pl.BlockSpec((He, 4 * He), const2),       # fwd W_hh^T
            pl.BlockSpec((1, 4 * He), const2),        # fwd bias
            pl.BlockSpec((Din, 4 * He), const2),      # bwd W_ih^T
            pl.BlockSpec((He, 4 * He), const2),       # bwd W_hh^T
            pl.BlockSpec((1, 4 * He), const2),        # bwd bias
        ],
        out_specs=[
            pl.BlockSpec((S, B, 2 * He), const3),     # y (resident accumulator)
            pl.BlockSpec((B, 2 * He), const2),        # final h (fwd|bwd)
            pl.BlockSpec((B, 2 * He), const2),        # final c (fwd|bwd)
        ],
        out_shape=(
            jax.ShapeDtypeStruct((S, B, 2 * He), jnp.float32),
            jax.ShapeDtypeStruct((B, 2 * He), jnp.float32),
            jax.ShapeDtypeStruct((B, 2 * He), jnp.float32),
        ),
        scratch_shapes=[pltpu.VMEM((B, He), jnp.float32),   # h fwd
                        pltpu.VMEM((B, He), jnp.float32),   # c fwd
                        pltpu.VMEM((B, He), jnp.float32),   # h bwd
                        pltpu.VMEM((B, He), jnp.float32)],  # c bwd
        compiler_params=pltpu.CompilerParams(
            dimension_semantics=("arbitrary",)),
    )(x_tm, len2d, p_f['w_ih_T'], p_f['w_hh_T'], p_f['b'],
      p_b['w_ih_T'], p_b['w_hh_T'], p_b['b'])
    return y, h_fin, c_fin


def run_encoder(emb_src, lengths, enc_params):
    """Bidirectional multi-layer LSTM with packed-sequence (length-mask) semantics."""
    B, S, _ = emb_src.shape
    len2d = lengths.astype(jnp.int32).reshape(B, 1)
    x_tm = jnp.swapaxes(emb_src, 0, 1)                 # [S, B, Din]
    h0_list, c0_list = [], []
    for layer in enc_params:
        x_tm, h_fin, c_fin = _encoder_layer(x_tm, len2d, layer)
        # fast_merge_encoder_hiddens: per layer concat(fwd, bwd) along feature —
        # already produced concatenated by the kernel.
        h0_list.append(h_fin)
        c0_list.append(c_fin)
    h_src = jnp.swapaxes(x_tm, 0, 1)                   # [B, S, H]
    return h_src, jnp.stack(h0_list), jnp.stack(c0_list)


# ----------------------------------------------------------------------------
# Decoder: fully fused input-feeding LSTM stack + attention + concat/tanh
# ----------------------------------------------------------------------------

def make_decoder_kernel(n_layers, H):
    n_fixed = 9
    n_w = 4 + 3 * (n_layers - 1)

    def kernel(*refs):
        (emb_ref, h0_ref, c0_ref, hsrc_ref, mbias_ref,
         wattn_ref, wcat1_ref, wcat2_ref, bcat_ref) = refs[:n_fixed]
        w_refs = refs[n_fixed:n_fixed + n_w]
        out_ref = refs[n_fixed + n_w]
        h_sc, c_sc, ht_sc = refs[n_fixed + n_w + 1:]

        t = pl.program_id(0)

        @pl.when(t == 0)
        def _():
            h_sc[...] = h0_ref[...]
            c_sc[...] = c0_ref[...]
            ht_sc[...] = jnp.zeros_like(ht_sc)

        emb_t = emb_ref[0]                              # [B, W]
        ht_prev = ht_sc[...]                            # [B, H]  (input feeding)

        # layer 0: concat([emb_t, h_tilde_prev]) @ W_ih  ==  emb@W_emb + ht@W_feed
        gates = (_dot(emb_t, w_refs[0][...]) + _dot(ht_prev, w_refs[1][...])
                 + _dot(h_sc[0], w_refs[2][...]) + w_refs[3][...])
        h_new, c_new = _lstm_gates(gates, c_sc[0], H)
        h_sc[0] = h_new
        c_sc[0] = c_new
        x = h_new
        widx = 4
        for l in range(1, n_layers):
            gates = (_dot(x, w_refs[widx][...]) + _dot(h_sc[l], w_refs[widx + 1][...])
                     + w_refs[widx + 2][...])
            h_new, c_new = _lstm_gates(gates, c_sc[l], H)
            h_sc[l] = h_new
            c_sc[l] = c_new
            x = h_new
            widx += 3

        dec_out = x                                     # top-layer output [B, H]

        # --- attention, batched over B (MXU einsums; h_src stays VMEM-resident) ---
        hs = hsrc_ref[...]                              # [B, S, H]
        q = _dot(dec_out, wattn_ref[...])               # [B, H]
        scores = jnp.einsum('bqh,bsh->bqs',
                            q[:, None, :].astype(MXU_DTYPE), hs.astype(MXU_DTYPE),
                            preferred_element_type=jnp.float32)      # [B, 1, S]
        scores = scores + mbias_ref[...][:, None, :]    # additive -1e30 pad mask
        scores = scores - jnp.max(scores, axis=-1, keepdims=True)
        p = jnp.exp(scores)
        p = p / jnp.sum(p, axis=-1, keepdims=True)
        ctx = jnp.einsum('bqs,bsh->bqh',
                         p.astype(MXU_DTYPE), hs.astype(MXU_DTYPE),
                         preferred_element_type=jnp.float32)[:, 0, :]  # [B, H]

        # concat([dec_out, ctx]) @ W_cat == dec_out @ W1 + ctx @ W2
        h_tilde = jnp.tanh(_dot(dec_out, wcat1_ref[...]) + _dot(ctx, wcat2_ref[...])
                           + bcat_ref[...])
        ht_sc[...] = h_tilde
        out_ref[0] = h_tilde

    return kernel


def run_decoder(emb_tgt, h0, c0, dec_params, w_attn_T, w_cat1_T, w_cat2_T, b_cat,
                mask_bias, h_src):
    B, T, W = emb_tgt.shape
    L = h0.shape[0]
    S, H = h_src.shape[1], h_src.shape[2]
    emb_tm = jnp.swapaxes(emb_tgt, 0, 1)                # [T, B, W]

    const2 = lambda t: (0, 0)
    const3 = lambda t: (0, 0, 0)

    in_specs = [
        pl.BlockSpec((1, B, W), lambda t: (t, 0, 0)),   # emb_t (streamed per step)
        pl.BlockSpec((L, B, H), const3),                # h0 (resident)
        pl.BlockSpec((L, B, H), const3),                # c0 (resident)
        pl.BlockSpec((B, S, H), const3),                # h_src (resident)
        pl.BlockSpec((B, S), const2),                   # mask bias (resident)
        pl.BlockSpec((H, H), const2),                   # W_attn^T
        pl.BlockSpec((H, H), const2),                   # W_concat (dec_out half)
        pl.BlockSpec((H, H), const2),                   # W_concat (context half)
        pl.BlockSpec((1, H), const2),                   # b_concat
    ]
    args = [emb_tm, h0, c0, h_src, mask_bias, w_attn_T, w_cat1_T, w_cat2_T, b_cat]
    for l, p in enumerate(dec_params):
        if l == 0:
            in_specs += [pl.BlockSpec(p['w_emb_T'].shape, const2),
                         pl.BlockSpec(p['w_feed_T'].shape, const2),
                         pl.BlockSpec(p['w_hh_T'].shape, const2),
                         pl.BlockSpec((1, 4 * H), const2)]
            args += [p['w_emb_T'], p['w_feed_T'], p['w_hh_T'], p['b']]
        else:
            in_specs += [pl.BlockSpec(p['w_ih_T'].shape, const2),
                         pl.BlockSpec(p['w_hh_T'].shape, const2),
                         pl.BlockSpec((1, 4 * H), const2)]
            args += [p['w_ih_T'], p['w_hh_T'], p['b']]

    h_tilde_tm = pl.pallas_call(
        make_decoder_kernel(L, H),
        grid=(T,),
        in_specs=in_specs,
        out_specs=pl.BlockSpec((1, B, H), lambda t: (t, 0, 0)),
        out_shape=jax.ShapeDtypeStruct((T, B, H), jnp.float32),
        scratch_shapes=[pltpu.VMEM((L, B, H), jnp.float32),   # h carry
                        pltpu.VMEM((L, B, H), jnp.float32),   # c carry
                        pltpu.VMEM((B, H), jnp.float32)],     # h_tilde carry
        compiler_params=pltpu.CompilerParams(
            dimension_semantics=("arbitrary",)),
    )(*args)
    return jnp.swapaxes(h_tilde_tm, 0, 1)               # [B, T, H]


# ----------------------------------------------------------------------------
# Generator: row-tiled linear + log-softmax
# ----------------------------------------------------------------------------

def generator_kernel(x_ref, w_ref, b_ref, out_ref):
    logits = _dot(x_ref[...], w_ref[...]) + b_ref[...]
    m = jnp.max(logits, axis=-1, keepdims=True)
    z = logits - m
    lse = jnp.log(jnp.sum(jnp.exp(z), axis=-1, keepdims=True))
    out_ref[...] = z - lse


def generator(h_tilde, w_gen_T, b_gen):
    B, T, H = h_tilde.shape
    V = w_gen_T.shape[-1]
    N = B * T
    # pad rows to a sublane multiple so stores are unmasked
    row_tile = min(256, ((N + 7) // 8) * 8)
    Np = pl.cdiv(N, row_tile) * row_tile
    x = h_tilde.reshape(N, H)
    if Np != N:
        x = jnp.pad(x, ((0, Np - N), (0, 0)))
    # TODO(synk): for production vocab sizes, additionally tile the V axis with an
    # online log-sum-exp in VMEM scratch so the weight block fits the VMEM budget.
    y = pl.pallas_call(
        generator_kernel,
        grid=(Np // row_tile,),
        in_specs=[pl.BlockSpec((row_tile, H), lambda i: (i, 0)),
                  pl.BlockSpec((H, V), lambda i: (0, 0)),
                  pl.BlockSpec((1, V), lambda i: (0, 0))],
        out_specs=pl.BlockSpec((row_tile, V), lambda i: (i, 0)),
        out_shape=jax.ShapeDtypeStruct((Np, V), jnp.float32),
        compiler_params=pltpu.CompilerParams(
            dimension_semantics=("parallel",)),
    )(x, w_gen_T, b_gen)
    return y[:N].reshape(B, T, V)


# ----------------------------------------------------------------------------
# Full forward
# ----------------------------------------------------------------------------

def seq2seq_forward(params, src, lengths, tgt):
    B, S = src.shape

    # additive attention mask: 0 where valid, large-finite-negative where padded
    # (finite sentinel avoids inf-inf -> NaN for fully-padded rows)
    mask_bias = jnp.where(jnp.arange(S)[None, :] >= lengths[:, None],
                          jnp.float32(-1e30), jnp.float32(0.0))       # [B, S]

    emb_src = jnp.take(params['emb_src'], src, axis=0)                 # [B, S, W]
    emb_tgt = jnp.take(params['emb_dec'], tgt, axis=0)                 # [B, T, W]

    h_src, h0, c0 = run_encoder(emb_src, lengths, params['enc'])

    h_tilde = run_decoder(emb_tgt, h0, c0, params['dec'],
                          params['w_attn_T'], params['w_concat1_T'],
                          params['w_concat2_T'], params['b_concat'],
                          mask_bias, h_src)
    return generator(h_tilde, params['w_gen_T'], params['b_gen'])


# ----------------------------------------------------------------------------
# Deterministic parameter init
# ----------------------------------------------------------------------------

def init_params(key, input_size, output_size, word_vec_size, hidden_size, n_layers):
    He = hidden_size // 2
    keys = iter(jax.random.split(key, 128))

    def u(shape, scale=0.1):
        return jax.random.uniform(next(keys), shape, jnp.float32, -scale, scale)

    params = {
        'emb_src': u((input_size, word_vec_size)),
        'emb_dec': u((output_size, word_vec_size)),
        'enc': [],
        'dec': [],
        'w_attn_T': u((hidden_size, hidden_size)),          # Linear(H, H, bias=False).T
        'w_concat1_T': u((hidden_size, hidden_size)),        # Linear(2H, H).T, rows :H
        'w_concat2_T': u((hidden_size, hidden_size)),        # Linear(2H, H).T, rows H:
        'b_concat': u((1, hidden_size)),
        'w_gen_T': u((hidden_size, output_size)),            # Linear(H, V).T
        'b_gen': u((1, output_size)),
    }
    for l in range(n_layers):
        in_dim = word_vec_size if l == 0 else hidden_size
        params['enc'].append({
            'fwd': {'w_ih_T': u((in_dim, 4 * He)), 'w_hh_T': u((He, 4 * He)),
                    'b': u((1, 4 * He))},
            'bwd': {'w_ih_T': u((in_dim, 4 * He)), 'w_hh_T': u((He, 4 * He)),
                    'b': u((1, 4 * He))},
        })
    for l in range(n_layers):
        if l == 0:
            # input-feeding layer: W_ih of Linear(W + H, 4H) split into two parts
            params['dec'].append({
                'w_emb_T': u((word_vec_size, 4 * hidden_size)),
                'w_feed_T': u((hidden_size, 4 * hidden_size)),
                'w_hh_T': u((hidden_size, 4 * hidden_size)),
                'b': u((1, 4 * hidden_size)),
            })
        else:
            params['dec'].append({
                'w_ih_T': u((hidden_size, 4 * hidden_size)),
                'w_hh_T': u((hidden_size, 4 * hidden_size)),
                'b': u((1, 4 * hidden_size)),
            })
    return params


# ----------------------------------------------------------------------------
# Main
# ----------------------------------------------------------------------------

if __name__ == "__main__":
    input_size = 20      # src vocab
    output_size = 22     # tgt vocab
    word_vec_size = 16
    hidden_size = 32
    n_layers = 2
    B, S, T = 2, 8, 6

    key = jax.random.PRNGKey(0)
    kp, ks, kt = jax.random.split(key, 3)

    params = init_params(kp, input_size, output_size, word_vec_size,
                         hidden_size, n_layers)
    src = jax.random.randint(ks, (B, S), 0, input_size, dtype=jnp.int32)
    tgt = jax.random.randint(kt, (B, T), 0, output_size, dtype=jnp.int32)
    lengths = jnp.array([S, 5], dtype=jnp.int32)   # sorted descending, max == S

    fwd = jax.jit(seq2seq_forward)
    y_hat = fwd(params, src, lengths, tgt)
    y_hat = jax.block_until_ready(y_hat)

    assert y_hat.shape == (B, T, output_size), y_hat.shape
    assert bool(jnp.all(jnp.isfinite(y_hat)))
    # log-softmax rows must exponentiate to a probability distribution
    assert bool(jnp.allclose(jnp.exp(y_hat).sum(-1), 1.0, atol=1e-4))
    print("KERNEL_OK")
</pallas_src>

<mosaic_0001>
module attributes {stable_mosaic.version = 11 : i64} {
  func.func @kernel(%arg0: i32, %arg1: memref<8x2x16xf32, #tpu.memory_space<vmem>>, %arg2: memref<2x1xi32, #tpu.memory_space<vmem>>, %arg3: memref<16x64xf32, #tpu.memory_space<vmem>>, %arg4: memref<16x64xf32, #tpu.memory_space<vmem>>, %arg5: memref<1x64xf32, #tpu.memory_space<vmem>>, %arg6: memref<16x64xf32, #tpu.memory_space<vmem>>, %arg7: memref<16x64xf32, #tpu.memory_space<vmem>>, %arg8: memref<1x64xf32, #tpu.memory_space<vmem>>, %arg9: memref<8x2x32xf32, #tpu.memory_space<vmem>>, %arg10: memref<2x32xf32, #tpu.memory_space<vmem>>, %arg11: memref<2x32xf32, #tpu.memory_space<vmem>>, %arg12: memref<2x16xf32, #tpu.memory_space<vmem>>, %arg13: memref<2x16xf32, #tpu.memory_space<vmem>>, %arg14: memref<2x16xf32, #tpu.memory_space<vmem>>, %arg15: memref<2x16xf32, #tpu.memory_space<vmem>>) attributes {dimension_semantics = [#tpu.dimension_semantics<arbitrary>], iteration_bounds = array<i64: 8>, scalar_prefetch = 0 : i64, scratch_operands = 4 : i64, tpu.core_type = #tpu.core_type<tc>, window_params = [{pipeline_mode = #tpu.pipeline_mode<synchronous>, transform_indices = @transform_0, window_bounds = array<i64: 8, 2, 16>}, {pipeline_mode = #tpu.pipeline_mode<synchronous>, transform_indices = @transform_1, window_bounds = array<i64: 2, 1>}, {pipeline_mode = #tpu.pipeline_mode<synchronous>, transform_indices = @transform_2, window_bounds = array<i64: 16, 64>}, {pipeline_mode = #tpu.pipeline_mode<synchronous>, transform_indices = @transform_3, window_bounds = array<i64: 16, 64>}, {pipeline_mode = #tpu.pipeline_mode<synchronous>, transform_indices = @transform_4, window_bounds = array<i64: 1, 64>}, {pipeline_mode = #tpu.pipeline_mode<synchronous>, transform_indices = @transform_5, window_bounds = array<i64: 16, 64>}, {pipeline_mode = #tpu.pipeline_mode<synchronous>, transform_indices = @transform_6, window_bounds = array<i64: 16, 64>}, {pipeline_mode = #tpu.pipeline_mode<synchronous>, transform_indices = @transform_7, window_bounds = array<i64: 1, 64>}, {pipeline_mode = #tpu.pipeline_mode<synchronous>, transform_indices = @transform_8, window_bounds = array<i64: 8, 2, 32>}, {pipeline_mode = #tpu.pipeline_mode<synchronous>, transform_indices = @transform_9, window_bounds = array<i64: 2, 32>}, {pipeline_mode = #tpu.pipeline_mode<synchronous>, transform_indices = @transform_10, window_bounds = array<i64: 2, 32>}]} {
    %c0_i32 = arith.constant 0 : i32
    %0 = arith.cmpi eq, %arg0, %c0_i32 : i32
    %1 = arith.extui %0 : i1 to i32
    %c0_i32_0 = arith.constant 0 : i32
    %2 = arith.cmpi ne, %1, %c0_i32_0 : i32
    scf.if %2 {
      %cst_50 = arith.constant 0.000000e+00 : f32
      %120 = vector.broadcast %cst_50 : f32 to vector<2x16xf32>
      %c0_51 = arith.constant 0 : index
      %c0_52 = arith.constant 0 : index
      %121 = vector.load %arg12[%c0_51, %c0_52] : memref<2x16xf32, #tpu.memory_space<vmem>>, vector<2x16xf32>
      tpu.vector_store %arg12[%c0_51, %c0_52], %120 {strides = array<i32>} : memref<2x16xf32, #tpu.memory_space<vmem>>, vector<2x16xf32>,
      %cst_53 = arith.constant 0.000000e+00 : f32
      %122 = vector.broadcast %cst_53 : f32 to vector<2x16xf32>
      %c0_54 = arith.constant 0 : index
      %c0_55 = arith.constant 0 : index
      %123 = vector.load %arg13[%c0_54, %c0_55] : memref<2x16xf32, #tpu.memory_space<vmem>>, vector<2x16xf32>
      tpu.vector_store %arg13[%c0_54, %c0_55], %122 {strides = array<i32>} : memref<2x16xf32, #tpu.memory_space<vmem>>, vector<2x16xf32>,
      %cst_56 = arith.constant 0.000000e+00 : f32
      %124 = vector.broadcast %cst_56 : f32 to vector<2x16xf32>
      %c0_57 = arith.constant 0 : index
      %c0_58 = arith.constant 0 : index
      %125 = vector.load %arg14[%c0_57, %c0_58] : memref<2x16xf32, #tpu.memory_space<vmem>>, vector<2x16xf32>
      tpu.vector_store %arg14[%c0_57, %c0_58], %124 {strides = array<i32>} : memref<2x16xf32, #tpu.memory_space<vmem>>, vector<2x16xf32>,
      %cst_59 = arith.constant 0.000000e+00 : f32
      %126 = vector.broadcast %cst_59 : f32 to vector<2x16xf32>
      %c0_60 = arith.constant 0 : index
      %c0_61 = arith.constant 0 : index
      %127 = vector.load %arg15[%c0_60, %c0_61] : memref<2x16xf32, #tpu.memory_space<vmem>>, vector<2x16xf32>
      tpu.vector_store %arg15[%c0_60, %c0_61], %126 {strides = array<i32>} : memref<2x16xf32, #tpu.memory_space<vmem>>, vector<2x16xf32>,
    } else {
    }
    %c7_i32 = arith.constant 7 : i32
    %3 = arith.subi %c7_i32, %arg0 : i32
    %c0 = arith.constant 0 : index
    %c0_1 = arith.constant 0 : index
    %4 = vector.load %arg2[%c0, %c0_1] : memref<2x1xi32, #tpu.memory_space<vmem>>, vector<2x1xi32>
    %5 = arith.index_cast %arg0 : i32 to index
    %c0_2 = arith.constant 0 : index
    %c0_3 = arith.constant 0 : index
    %6 = vector.load %arg1[%5, %c0_2, %c0_3] : memref<8x2x16xf32, #tpu.memory_space<vmem>>, vector<1x2x16xf32>
    %7 = vector.shape_cast %6 : vector<1x2x16xf32> to vector<2x16xf32>
    %c0_4 = arith.constant 0 : index
    %c0_5 = arith.constant 0 : index
    %8 = vector.load %arg12[%c0_4, %c0_5] : memref<2x16xf32, #tpu.memory_space<vmem>>, vector<2x16xf32>
    %c0_6 = arith.constant 0 : index
    %c0_7 = arith.constant 0 : index
    %9 = vector.load %arg13[%c0_6, %c0_7] : memref<2x16xf32, #tpu.memory_space<vmem>>, vector<2x16xf32>
    %c0_8 = arith.constant 0 : index
    %c0_9 = arith.constant 0 : index
    %10 = vector.load %arg3[%c0_8, %c0_9] : memref<16x64xf32, #tpu.memory_space<vmem>>, vector<16x64xf32>
    %cst = arith.constant dense<0.000000e+00> : vector<2x64xf32>
    %11 = tpu.matmul %7, %10, %cst {dimension_numbers = #tpu.dot_dimension_numbers<[1], [0], [0], [1], [0, 0, 1, 1], [], []>} : vector<2x16xf32>, vector<16x64xf32>, vector<2x64xf32> -> vector<2x64xf32>
    %c0_10 = arith.constant 0 : index
    %c0_11 = arith.constant 0 : index
    %12 = vector.load %arg4[%c0_10, %c0_11] : memref<16x64xf32, #tpu.memory_space<vmem>>, vector<16x64xf32>
    %cst_12 = arith.constant dense<0.000000e+00> : vector<2x64xf32>
    %13 = tpu.matmul %8, %12, %cst_12 {dimension_numbers = #tpu.dot_dimension_numbers<[1], [0], [0], [1], [0, 0, 1, 1], [], []>} : vector<2x16xf32>, vector<16x64xf32>, vector<2x64xf32> -> vector<2x64xf32>
    %14 = arith.addf %11, %13 : vector<2x64xf32>
    %c0_13 = arith.constant 0 : index
    %c0_14 = arith.constant 0 : index
    %15 = vector.load %arg5[%c0_13, %c0_14] : memref<1x64xf32, #tpu.memory_space<vmem>>, vector<1x64xf32>
    %16 = vector.broadcast %15 : vector<1x64xf32> to vector<2x64xf32>
    %17 = arith.addf %14, %16 : vector<2x64xf32>
    %18 = vector.extract_strided_slice %17 {offsets = [0, 0], sizes = [2, 16], strides = [1, 1]} : vector<2x64xf32> to vector<2x16xf32>
    %19 = arith.negf %18 : vector<2x16xf32>
    %20 = math.exp %19 : vector<2x16xf32>
    %cst_15 = arith.constant 1.000000e+00 : f32
    %21 = vector.broadcast %cst_15 : f32 to vector<2x16xf32>
    %22 = arith.addf %21, %20 : vector<2x16xf32>
    %23 = arith.divf %21, %22 : vector<2x16xf32>
    %24 = vector.extract_strided_slice %17 {offsets = [0, 16], sizes = [2, 16], strides = [1, 1]} : vector<2x64xf32> to vector<2x16xf32>
    %25 = arith.negf %24 : vector<2x16xf32>
    %26 = math.exp %25 : vector<2x16xf32>
    %cst_16 = arith.constant 1.000000e+00 : f32
    %27 = vector.broadcast %cst_16 : f32 to vector<2x16xf32>
    %28 = arith.addf %27, %26 : vector<2x16xf32>
    %29 = arith.divf %27, %28 : vector<2x16xf32>
    %30 = vector.extract_strided_slice %17 {offsets = [0, 32], sizes = [2, 16], strides = [1, 1]} : vector<2x64xf32> to vector<2x16xf32>
    %31 = math.tanh %30 : vector<2x16xf32>
    %32 = vector.extract_strided_slice %17 {offsets = [0, 48], sizes = [2, 16], strides = [1, 1]} : vector<2x64xf32> to vector<2x16xf32>
    %33 = arith.negf %32 : vector<2x16xf32>
    %34 = math.exp %33 : vector<2x16xf32>
    %cst_17 = arith.constant 1.000000e+00 : f32
    %35 = vector.broadcast %cst_17 : f32 to vector<2x16xf32>
    %36 = arith.addf %35, %34 : vector<2x16xf32>
    %37 = arith.divf %35, %36 : vector<2x16xf32>
    %38 = arith.mulf %29, %9 : vector<2x16xf32>
    %39 = arith.mulf %23, %31 : vector<2x16xf32>
    %40 = arith.addf %38, %39 : vector<2x16xf32>
    %41 = math.tanh %40 : vector<2x16xf32>
    %42 = arith.mulf %37, %41 : vector<2x16xf32>
    %43 = vector.broadcast %arg0 : i32 to vector<2x1xi32>
    %44 = arith.cmpi sgt, %4, %43 : vector<2x1xi32>
    %45 = vector.shape_cast %44 : vector<2x1xi1> to vector<2x1xi1>
    %46 = vector.broadcast %45 : vector<2x1xi1> to vector<2x16xi1>
    %47 = arith.select %46, %42, %8 : vector<2x16xi1>, vector<2x16xf32>
    %c0_18 = arith.constant 0 : index
    %c0_19 = arith.constant 0 : index
    %48 = vector.load %arg12[%c0_18, %c0_19] : memref<2x16xf32, #tpu.memory_space<vmem>>, vector<2x16xf32>
    tpu.vector_store %arg12[%c0_18, %c0_19], %47 {strides = array<i32>} : memref<2x16xf32, #tpu.memory_space<vmem>>, vector<2x16xf32>,
    %49 = vector.shape_cast %44 : vector<2x1xi1> to vector<2x1xi1>
    %50 = vector.broadcast %49 : vector<2x1xi1> to vector<2x16xi1>
    %51 = arith.select %50, %40, %9 : vector<2x16xi1>, vector<2x16xf32>
    %c0_20 = arith.constant 0 : index
    %c0_21 = arith.constant 0 : index
    %52 = vector.load %arg13[%c0_20, %c0_21] : memref<2x16xf32, #tpu.memory_space<vmem>>, vector<2x16xf32>
    tpu.vector_store %arg13[%c0_20, %c0_21], %51 {strides = array<i32>} : memref<2x16xf32, #tpu.memory_space<vmem>>, vector<2x16xf32>,
    %cst_22 = arith.constant 0.000000e+00 : f32
    %53 = vector.shape_cast %44 : vector<2x1xi1> to vector<2x1xi1>
    %54 = vector.broadcast %53 : vector<2x1xi1> to vector<2x16xi1>
    %55 = vector.broadcast %cst_22 : f32 to vector<2x16xf32>
    %56 = arith.select %54, %42, %55 : vector<2x16xi1>, vector<2x16xf32>
    %57 = arith.index_cast %arg0 : i32 to index
    %c0_23 = arith.constant 0 : index
    %c0_24 = arith.constant 0 : index
    %58 = vector.load %arg9[%57, %c0_23, %c0_24] : memref<8x2x32xf32, #tpu.memory_space<vmem>>, vector<1x2x16xf32>
    %59 = vector.shape_cast %58 : vector<1x2x16xf32> to vector<2x16xf32>
    %60 = vector.shape_cast %56 : vector<2x16xf32> to vector<1x2x16xf32>
    tpu.vector_store %arg9[%57, %c0_23, %c0_24], %60 {strides = array<i32>} : memref<8x2x32xf32, #tpu.memory_space<vmem>>, vector<1x2x16xf32>,
    %61 = arith.index_cast %3 : i32 to index
    %c0_25 = arith.constant 0 : index
    %c0_26 = arith.constant 0 : index
    %62 = vector.load %arg1[%61, %c0_25, %c0_26] : memref<8x2x16xf32, #tpu.memory_space<vmem>>, vector<1x2x16xf32>
    %63 = vector.shape_cast %62 : vector<1x2x16xf32> to vector<2x16xf32>
    %c0_27 = arith.constant 0 : index
    %c0_28 = arith.constant 0 : index
    %64 = vector.load %arg14[%c0_27, %c0_28] : memref<2x16xf32, #tpu.memory_space<vmem>>, vector<2x16xf32>
    %c0_29 = arith.constant 0 : index
    %c0_30 = arith.constant 0 : index
    %65 = vector.load %arg15[%c0_29, %c0_30] : memref<2x16xf32, #tpu.memory_space<vmem>>, vector<2x16xf32>
    %c0_31 = arith.constant 0 : index
    %c0_32 = arith.constant 0 : index
    %66 = vector.load %arg6[%c0_31, %c0_32] : memref<16x64xf32, #tpu.memory_space<vmem>>, vector<16x64xf32>
    %cst_33 = arith.constant dense<0.000000e+00> : vector<2x64xf32>
    %67 = tpu.matmul %63, %66, %cst_33 {dimension_numbers = #tpu.dot_dimension_numbers<[1], [0], [0], [1], [0, 0, 1, 1], [], []>} : vector<2x16xf32>, vector<16x64xf32>, vector<2x64xf32> -> vector<2x64xf32>
    %c0_34 = arith.constant 0 : index
    %c0_35 = arith.constant 0 : index
    %68 = vector.load %arg7[%c0_34, %c0_35] : memref<16x64xf32, #tpu.memory_space<vmem>>, vector<16x64xf32>
    %cst_36 = arith.constant dense<0.000000e+00> : vector<2x64xf32>
    %69 = tpu.matmul %64, %68, %cst_36 {dimension_numbers = #tpu.dot_dimension_numbers<[1], [0], [0], [1], [0, 0, 1, 1], [], []>} : vector<2x16xf32>, vector<16x64xf32>, vector<2x64xf32> -> vector<2x64xf32>
    %70 = arith.addf %67, %69 : vector<2x64xf32>
    %c0_37 = arith.constant 0 : index
    %c0_38 = arith.constant 0 : index
    %71 = vector.load %arg8[%c0_37, %c0_38] : memref<1x64xf32, #tpu.memory_space<vmem>>, vector<1x64xf32>
    %72 = vector.broadcast %71 : vector<1x64xf32> to vector<2x64xf32>
    %73 = arith.addf %70, %72 : vector<2x64xf32>
    %74 = vector.extract_strided_slice %73 {offsets = [0, 0], sizes = [2, 16], strides = [1, 1]} : vector<2x64xf32> to vector<2x16xf32>
    %75 = arith.negf %74 : vector<2x16xf32>
    %76 = math.exp %75 : vector<2x16xf32>
    %cst_39 = arith.constant 1.000000e+00 : f32
    %77 = vector.broadcast %cst_39 : f32 to vector<2x16xf32>
    %78 = arith.addf %77, %76 : vector<2x16xf32>
    %79 = arith.divf %77, %78 : vector<2x16xf32>
    %80 = vector.extract_strided_slice %73 {offsets = [0, 16], sizes = [2, 16], strides = [1, 1]} : vector<2x64xf32> to vector<2x16xf32>
    %81 = arith.negf %80 : vector<2x16xf32>
    %82 = math.exp %81 : vector<2x16xf32>
    %cst_40 = arith.constant 1.000000e+00 : f32
    %83 = vector.broadcast %cst_40 : f32 to vector<2x16xf32>
    %84 = arith.addf %83, %82 : vector<2x16xf32>
    %85 = arith.divf %83, %84 : vector<2x16xf32>
    %86 = vector.extract_strided_slice %73 {offsets = [0, 32], sizes = [2, 16], strides = [1, 1]} : vector<2x64xf32> to vector<2x16xf32>
    %87 = math.tanh %86 : vector<2x16xf32>
    %88 = vector.extract_strided_slice %73 {offsets = [0, 48], sizes = [2, 16], strides = [1, 1]} : vector<2x64xf32> to vector<2x16xf32>
    %89 = arith.negf %88 : vector<2x16xf32>
    %90 = math.exp %89 : vector<2x16xf32>
    %cst_41 = arith.constant 1.000000e+00 : f32
    %91 = vector.broadcast %cst_41 : f32 to vector<2x16xf32>
    %92 = arith.addf %91, %90 : vector<2x16xf32>
    %93 = arith.divf %91, %92 : vector<2x16xf32>
    %94 = arith.mulf %85, %65 : vector<2x16xf32>
    %95 = arith.mulf %79, %87 : vector<2x16xf32>
    %96 = arith.addf %94, %95 : vector<2x16xf32>
    %97 = math.tanh %96 : vector<2x16xf32>
    %98 = arith.mulf %93, %97 : vector<2x16xf32>
    %99 = vector.broadcast %3 : i32 to vector<2x1xi32>
    %100 = arith.cmpi sgt, %4, %99 : vector<2x1xi32>
    %101 = vector.shape_cast %100 : vector<2x1xi1> to vector<2x1xi1>
    %102 = vector.broadcast %101 : vector<2x1xi1> to vector<2x16xi1>
    %103 = arith.select %102, %98, %64 : vector<2x16xi1>, vector<2x16xf32>
    %c0_42 = arith.constant 0 : index
    %c0_43 = arith.constant 0 : index
    %104 = vector.load %arg14[%c0_42, %c0_43] : memref<2x16xf32, #tpu.memory_space<vmem>>, vector<2x16xf32>
    tpu.vector_store %arg14[%c0_42, %c0_43], %103 {strides = array<i32>} : memref<2x16xf32, #tpu.memory_space<vmem>>, vector<2x16xf32>,
    %105 = vector.shape_cast %100 : vector<2x1xi1> to vector<2x1xi1>
    %106 = vector.broadcast %105 : vector<2x1xi1> to vector<2x16xi1>
    %107 = arith.select %106, %96, %65 : vector<2x16xi1>, vector<2x16xf32>
    %c0_44 = arith.constant 0 : index
    %c0_45 = arith.constant 0 : index
    %108 = vector.load %arg15[%c0_44, %c0_45] : memref<2x16xf32, #tpu.memory_space<vmem>>, vector<2x16xf32>
    tpu.vector_store %arg15[%c0_44, %c0_45], %107 {strides = array<i32>} : memref<2x16xf32, #tpu.memory_space<vmem>>, vector<2x16xf32>,
    %cst_46 = arith.constant 0.000000e+00 : f32
    %109 = vector.shape_cast %100 : vector<2x1xi1> to vector<2x1xi1>
    %110 = vector.broadcast %109 : vector<2x1xi1> to vector<2x16xi1>
    %111 = vector.broadcast %cst_46 : f32 to vector<2x16xf32>
    %112 = arith.select %110, %98, %111 : vector<2x16xi1>, vector<2x16xf32>
    %113 = arith.index_cast %3 : i32 to index
    %c0_47 = arith.constant 0 : index
    %c16 = arith.constant 16 : index
    %114 = vector.load %arg9[%113, %c0_47, %c16] : memref<8x2x32xf32, #tpu.memory_space<vmem>>, vector<1x2x16xf32>
    %115 = vector.shape_cast %114 : vector<1x2x16xf32> to vector<2x16xf32>
    %116 = vector.shape_cast %112 : vector<2x16xf32> to vector<1x2x16xf32>
    tpu.vector_store %arg9[%113, %c0_47, %c16], %116 {strides = array<i32>} : memref<8x2x32xf32, #tpu.memory_space<vmem>>, vector<1x2x16xf32>,
    %c7_i32_48 = arith.constant 7 : i32
    %117 = arith.cmpi eq, %arg0, %c7_i32_48 : i32
    %118 = arith.extui %117 : i1 to i32
    %c0_i32_49 = arith.constant 0 : i32
    %119 = arith.cmpi ne, %118, %c0_i32_49 : i32
    scf.if %119 {
      %c0_50 = arith.constant 0 : index
      %c0_51 = arith.constant 0 : index
      %120 = vector.load %arg12[%c0_50, %c0_51] : memref<2x16xf32, #tpu.memory_space<vmem>>, vector<2x16xf32>
      %c0_52 = arith.constant 0 : index
      %c0_53 = arith.constant 0 : index
      %121 = vector.load %arg10[%c0_52, %c0_53] : memref<2x32xf32, #tpu.memory_space<vmem>>, vector<2x16xf32>
      tpu.vector_store %arg10[%c0_52, %c0_53], %120 {strides = array<i32>} : memref<2x32xf32, #tpu.memory_space<vmem>>, vector<2x16xf32>,
      %c0_54 = arith.constant 0 : index
      %c0_55 = arith.constant 0 : index
      %122 = vector.load %arg14[%c0_54, %c0_55] : memref<2x16xf32, #tpu.memory_space<vmem>>, vector<2x16xf32>
      %c0_56 = arith.constant 0 : index
      %c16_57 = arith.constant 16 : index
      %123 = vector.load %arg10[%c0_56, %c16_57] : memref<2x32xf32, #tpu.memory_space<vmem>>, vector<2x16xf32>
      tpu.vector_store %arg10[%c0_56, %c16_57], %122 {strides = array<i32>} : memref<2x32xf32, #tpu.memory_space<vmem>>, vector<2x16xf32>,
      %c0_58 = arith.constant 0 : index
      %c0_59 = arith.constant 0 : index
      %124 = vector.load %arg13[%c0_58, %c0_59] : memref<2x16xf32, #tpu.memory_space<vmem>>, vector<2x16xf32>
      %c0_60 = arith.constant 0 : index
      %c0_61 = arith.constant 0 : index
      %125 = vector.load %arg11[%c0_60, %c0_61] : memref<2x32xf32, #tpu.memory_space<vmem>>, vector<2x16xf32>
      tpu.vector_store %arg11[%c0_60, %c0_61], %124 {strides = array<i32>} : memref<2x32xf32, #tpu.memory_space<vmem>>, vector<2x16xf32>,
      %c0_62 = arith.constant 0 : index
      %c0_63 = arith.constant 0 : index
      %126 = vector.load %arg15[%c0_62, %c0_63] : memref<2x16xf32, #tpu.memory_space<vmem>>, vector<2x16xf32>
      %c0_64 = arith.constant 0 : index
      %c16_65 = arith.constant 16 : index
      %127 = vector.load %arg11[%c0_64, %c16_65] : memref<2x32xf32, #tpu.memory_space<vmem>>, vector<2x16xf32>
      tpu.vector_store %arg11[%c0_64, %c16_65], %126 {strides = array<i32>} : memref<2x32xf32, #tpu.memory_space<vmem>>, vector<2x16xf32>,
    } else {
    }
    return
  }
  func.func @transform_0(%arg0: i32) -> (i32, i32, i32) {
    %c0_i32 = arith.constant 0 : i32
    %c0_i32_0 = arith.constant 0 : i32
    %c0_i32_1 = arith.constant 0 : i32
    %c0_i32_2 = arith.constant 0 : i32
    return %c0_i32, %c0_i32_0, %c0_i32_1 : i32, i32, i32
  }
  func.func @transform_1(%arg0: i32) -> (i32, i32) {
    %c0_i32 = arith.constant 0 : i32
    %c0_i32_0 = arith.constant 0 : i32
    %c0_i32_1 = arith.constant 0 : i32
    return %c0_i32, %c0_i32_0 : i32, i32
  }
  func.func @transform_2(%arg0: i32) -> (i32, i32) {
    %c0_i32 = arith.constant 0 : i32
    %c0_i32_0 = arith.constant 0 : i32
    %c0_i32_1 = arith.constant 0 : i32
    return %c0_i32, %c0_i32_0 : i32, i32
  }
  func.func @transform_3(%arg0: i32) -> (i32, i32) {
    %c0_i32 = arith.constant 0 : i32
    %c0_i32_0 = arith.constant 0 : i32
    %c0_i32_1 = arith.constant 0 : i32
    return %c0_i32, %c0_i32_0 : i32, i32
  }
  func.func @transform_4(%arg0: i32) -> (i32, i32) {
    %c0_i32 = arith.constant 0 : i32
    %c0_i32_0 = arith.constant 0 : i32
    %c0_i32_1 = arith.constant 0 : i32
    return %c0_i32, %c0_i32_0 : i32, i32
  }
  func.func @transform_5(%arg0: i32) -> (i32, i32) {
    %c0_i32 = arith.constant 0 : i32
    %c0_i32_0 = arith.constant 0 : i32
    %c0_i32_1 = arith.constant 0 : i32
    return %c0_i32, %c0_i32_0 : i32, i32
  }
  func.func @transform_6(%arg0: i32) -> (i32, i32) {
    %c0_i32 = arith.constant 0 : i32
    %c0_i32_0 = arith.constant 0 : i32
    %c0_i32_1 = arith.constant 0 : i32
    return %c0_i32, %c0_i32_0 : i32, i32
  }
  func.func @transform_7(%arg0: i32) -> (i32, i32) {
    %c0_i32 = arith.constant 0 : i32
    %c0_i32_0 = arith.constant 0 : i32
    %c0_i32_1 = arith.constant 0 : i32
    return %c0_i32, %c0_i32_0 : i32, i32
  }
  func.func @transform_8(%arg0: i32) -> (i32, i32, i32) {
    %c0_i32 = arith.constant 0 : i32
    %c0_i32_0 = arith.constant 0 : i32
    %c0_i32_1 = arith.constant 0 : i32
    %c0_i32_2 = arith.constant 0 : i32
    return %c0_i32, %c0_i32_0, %c0_i32_1 : i32, i32, i32
  }
  func.func @transform_9(%arg0: i32) -> (i32, i32) {
    %c0_i32 = arith.constant 0 : i32
    %c0_i32_0 = arith.constant 0 : i32
    %c0_i32_1 = arith.constant 0 : i32
    return %c0_i32, %c0_i32_0 : i32, i32
  }
  func.func @transform_10(%arg0: i32) -> (i32, i32) {
    %c0_i32 = arith.constant 0 : i32
    %c0_i32_0 = arith.constant 0 : i32
    %c0_i32_1 = arith.constant 0 : i32
    return %c0_i32, %c0_i32_0 : i32, i32
  }
}

module attributes {stable_mosaic.version = 11 : i64} {
  func.func @kernel(%arg0: i32, %arg1: memref<8x2x32xf32, #tpu.memory_space<vmem>>, %arg2: memref<2x1xi32, #tpu.memory_space<vmem>>, %arg3: memref<32x64xf32, #tpu.memory_space<vmem>>, %arg4: memref<16x64xf32, #tpu.memory_space<vmem>>, %arg5: memref<1x64xf32, #tpu.memory_space<vmem>>, %arg6: memref<32x64xf32, #tpu.memory_space<vmem>>, %arg7: memref<16x64xf32, #tpu.memory_space<vmem>>, %arg8: memref<1x64xf32, #tpu.memory_space<vmem>>, %arg9: memref<8x2x32xf32, #tpu.memory_space<vmem>>, %arg10: memref<2x32xf32, #tpu.memory_space<vmem>>, %arg11: memref<2x32xf32, #tpu.memory_space<vmem>>, %arg12: memref<2x16xf32, #tpu.memory_space<vmem>>, %arg13: memref<2x16xf32, #tpu.memory_space<vmem>>, %arg14: memref<2x16xf32, #tpu.memory_space<vmem>>, %arg15: memref<2x16xf32, #tpu.memory_space<vmem>>) attributes {dimension_semantics = [#tpu.dimension_semantics<arbitrary>], iteration_bounds = array<i64: 8>, scalar_prefetch = 0 : i64, scratch_operands = 4 : i64, tpu.core_type = #tpu.core_type<tc>, window_params = [{pipeline_mode = #tpu.pipeline_mode<synchronous>, transform_indices = @transform_0, window_bounds = array<i64: 8, 2, 32>}, {pipeline_mode = #tpu.pipeline_mode<synchronous>, transform_indices = @transform_1, window_bounds = array<i64: 2, 1>}, {pipeline_mode = #tpu.pipeline_mode<synchronous>, transform_indices = @transform_2, window_bounds = array<i64: 32, 64>}, {pipeline_mode = #tpu.pipeline_mode<synchronous>, transform_indices = @transform_3, window_bounds = array<i64: 16, 64>}, {pipeline_mode = #tpu.pipeline_mode<synchronous>, transform_indices = @transform_4, window_bounds = array<i64: 1, 64>}, {pipeline_mode = #tpu.pipeline_mode<synchronous>, transform_indices = @transform_5, window_bounds = array<i64: 32, 64>}, {pipeline_mode = #tpu.pipeline_mode<synchronous>, transform_indices = @transform_6, window_bounds = array<i64: 16, 64>}, {pipeline_mode = #tpu.pipeline_mode<synchronous>, transform_indices = @transform_7, window_bounds = array<i64: 1, 64>}, {pipeline_mode = #tpu.pipeline_mode<synchronous>, transform_indices = @transform_8, window_bounds = array<i64: 8, 2, 32>}, {pipeline_mode = #tpu.pipeline_mode<synchronous>, transform_indices = @transform_9, window_bounds = array<i64: 2, 32>}, {pipeline_mode = #tpu.pipeline_mode<synchronous>, transform_indices = @transform_10, window_bounds = array<i64: 2, 32>}]} {
    %c0_i32 = arith.constant 0 : i32
    %0 = arith.cmpi eq, %arg0, %c0_i32 : i32
    %1 = arith.extui %0 : i1 to i32
    %c0_i32_0 = arith.constant 0 : i32
    %2 = arith.cmpi ne, %1, %c0_i32_0 : i32
    scf.if %2 {
      %cst_50 = arith.constant 0.000000e+00 : f32
      %120 = vector.broadcast %cst_50 : f32 to vector<2x16xf32>
      %c0_51 = arith.constant 0 : index
      %c0_52 = arith.constant 0 : index
      %121 = vector.load %arg12[%c0_51, %c0_52] : memref<2x16xf32, #tpu.memory_space<vmem>>, vector<2x16xf32>
      tpu.vector_store %arg12[%c0_51, %c0_52], %120 {strides = array<i32>} : memref<2x16xf32, #tpu.memory_space<vmem>>, vector<2x16xf32>,
      %cst_53 = arith.constant 0.000000e+00 : f32
      %122 = vector.broadcast %cst_53 : f32 to vector<2x16xf32>
      %c0_54 = arith.constant 0 : index
      %c0_55 = arith.constant 0 : index
      %123 = vector.load %arg13[%c0_54, %c0_55] : memref<2x16xf32, #tpu.memory_space<vmem>>, vector<2x16xf32>
      tpu.vector_store %arg13[%c0_54, %c0_55], %122 {strides = array<i32>} : memref<2x16xf32, #tpu.memory_space<vmem>>, vector<2x16xf32>,
      %cst_56 = arith.constant 0.000000e+00 : f32
      %124 = vector.broadcast %cst_56 : f32 to vector<2x16xf32>
      %c0_57 = arith.constant 0 : index
      %c0_58 = arith.constant 0 : index
      %125 = vector.load %arg14[%c0_57, %c0_58] : memref<2x16xf32, #tpu.memory_space<vmem>>, vector<2x16xf32>
      tpu.vector_store %arg14[%c0_57, %c0_58], %124 {strides = array<i32>} : memref<2x16xf32, #tpu.memory_space<vmem>>, vector<2x16xf32>,
      %cst_59 = arith.constant 0.000000e+00 : f32
      %126 = vector.broadcast %cst_59 : f32 to vector<2x16xf32>
      %c0_60 = arith.constant 0 : index
      %c0_61 = arith.constant 0 : index
      %127 = vector.load %arg15[%c0_60, %c0_61] : memref<2x16xf32, #tpu.memory_space<vmem>>, vector<2x16xf32>
      tpu.vector_store %arg15[%c0_60, %c0_61], %126 {strides = array<i32>} : memref<2x16xf32, #tpu.memory_space<vmem>>, vector<2x16xf32>,
    } else {
    }
    %c7_i32 = arith.constant 7 : i32
    %3 = arith.subi %c7_i32, %arg0 : i32
    %c0 = arith.constant 0 : index
    %c0_1 = arith.constant 0 : index
    %4 = vector.load %arg2[%c0, %c0_1] : memref<2x1xi32, #tpu.memory_space<vmem>>, vector<2x1xi32>
    %5 = arith.index_cast %arg0 : i32 to index
    %c0_2 = arith.constant 0 : index
    %c0_3 = arith.constant 0 : index
    %6 = vector.load %arg1[%5, %c0_2, %c0_3] : memref<8x2x32xf32, #tpu.memory_space<vmem>>, vector<1x2x32xf32>
    %7 = vector.shape_cast %6 : vector<1x2x32xf32> to vector<2x32xf32>
    %c0_4 = arith.constant 0 : index
    %c0_5 = arith.constant 0 : index
    %8 = vector.load %arg12[%c0_4, %c0_5] : memref<2x16xf32, #tpu.memory_space<vmem>>, vector<2x16xf32>
    %c0_6 = arith.constant 0 : index
    %c0_7 = arith.constant 0 : index
    %9 = vector.load %arg13[%c0_6, %c0_7] : memref<2x16xf32, #tpu.memory_space<vmem>>, vector<2x16xf32>
    %c0_8 = arith.constant 0 : index
    %c0_9 = arith.constant 0 : index
    %10 = vector.load %arg3[%c0_8, %c0_9] : memref<32x64xf32, #tpu.memory_space<vmem>>, vector<32x64xf32>
    %cst = arith.constant dense<0.000000e+00> : vector<2x64xf32>
    %11 = tpu.matmul %7, %10, %cst {dimension_numbers = #tpu.dot_dimension_numbers<[1], [0], [0], [1], [0, 0, 1, 1], [], []>} : vector<2x32xf32>, vector<32x64xf32>, vector<2x64xf32> -> vector<2x64xf32>
    %c0_10 = arith.constant 0 : index
    %c0_11 = arith.constant 0 : index
    %12 = vector.load %arg4[%c0_10, %c0_11] : memref<16x64xf32, #tpu.memory_space<vmem>>, vector<16x64xf32>
    %cst_12 = arith.constant dense<0.000000e+00> : vector<2x64xf32>
    %13 = tpu.matmul %8, %12, %cst_12 {dimension_numbers = #tpu.dot_dimension_numbers<[1], [0], [0], [1], [0, 0, 1, 1], [], []>} : vector<2x16xf32>, vector<16x64xf32>, vector<2x64xf32> -> vector<2x64xf32>
    %14 = arith.addf %11, %13 : vector<2x64xf32>
    %c0_13 = arith.constant 0 : index
    %c0_14 = arith.constant 0 : index
    %15 = vector.load %arg5[%c0_13, %c0_14] : memref<1x64xf32, #tpu.memory_space<vmem>>, vector<1x64xf32>
    %16 = vector.broadcast %15 : vector<1x64xf32> to vector<2x64xf32>
    %17 = arith.addf %14, %16 : vector<2x64xf32>
    %18 = vector.extract_strided_slice %17 {offsets = [0, 0], sizes = [2, 16], strides = [1, 1]} : vector<2x64xf32> to vector<2x16xf32>
    %19 = arith.negf %18 : vector<2x16xf32>
    %20 = math.exp %19 : vector<2x16xf32>
    %cst_15 = arith.constant 1.000000e+00 : f32
    %21 = vector.broadcast %cst_15 : f32 to vector<2x16xf32>
    %22 = arith.addf %21, %20 : vector<2x16xf32>
    %23 = arith.divf %21, %22 : vector<2x16xf32>
    %24 = vector.extract_strided_slice %17 {offsets = [0, 16], sizes = [2, 16], strides = [1, 1]} : vector<2x64xf32> to vector<2x16xf32>
    %25 = arith.negf %24 : vector<2x16xf32>
    %26 = math.exp %25 : vector<2x16xf32>
    %cst_16 = arith.constant 1.000000e+00 : f32
    %27 = vector.broadcast %cst_16 : f32 to vector<2x16xf32>
    %28 = arith.addf %27, %26 : vector<2x16xf32>
    %29 = arith.divf %27, %28 : vector<2x16xf32>
    %30 = vector.extract_strided_slice %17 {offsets = [0, 32], sizes = [2, 16], strides = [1, 1]} : vector<2x64xf32> to vector<2x16xf32>
    %31 = math.tanh %30 : vector<2x16xf32>
    %32 = vector.extract_strided_slice %17 {offsets = [0, 48], sizes = [2, 16], strides = [1, 1]} : vector<2x64xf32> to vector<2x16xf32>
    %33 = arith.negf %32 : vector<2x16xf32>
    %34 = math.exp %33 : vector<2x16xf32>
    %cst_17 = arith.constant 1.000000e+00 : f32
    %35 = vector.broadcast %cst_17 : f32 to vector<2x16xf32>
    %36 = arith.addf %35, %34 : vector<2x16xf32>
    %37 = arith.divf %35, %36 : vector<2x16xf32>
    %38 = arith.mulf %29, %9 : vector<2x16xf32>
    %39 = arith.mulf %23, %31 : vector<2x16xf32>
    %40 = arith.addf %38, %39 : vector<2x16xf32>
    %41 = math.tanh %40 : vector<2x16xf32>
    %42 = arith.mulf %37, %41 : vector<2x16xf32>
    %43 = vector.broadcast %arg0 : i32 to vector<2x1xi32>
    %44 = arith.cmpi sgt, %4, %43 : vector<2x1xi32>
    %45 = vector.shape_cast %44 : vector<2x1xi1> to vector<2x1xi1>
    %46 = vector.broadcast %45 : vector<2x1xi1> to vector<2x16xi1>
    %47 = arith.select %46, %42, %8 : vector<2x16xi1>, vector<2x16xf32>
    %c0_18 = arith.constant 0 : index
    %c0_19 = arith.constant 0 : index
    %48 = vector.load %arg12[%c0_18, %c0_19] : memref<2x16xf32, #tpu.memory_space<vmem>>, vector<2x16xf32>
    tpu.vector_store %arg12[%c0_18, %c0_19], %47 {strides = array<i32>} : memref<2x16xf32, #tpu.memory_space<vmem>>, vector<2x16xf32>,
    %49 = vector.shape_cast %44 : vector<2x1xi1> to vector<2x1xi1>
    %50 = vector.broadcast %49 : vector<2x1xi1> to vector<2x16xi1>
    %51 = arith.select %50, %40, %9 : vector<2x16xi1>, vector<2x16xf32>
    %c0_20 = arith.constant 0 : index
    %c0_21 = arith.constant 0 : index
    %52 = vector.load %arg13[%c0_20, %c0_21] : memref<2x16xf32, #tpu.memory_space<vmem>>, vector<2x16xf32>
    tpu.vector_store %arg13[%c0_20, %c0_21], %51 {strides = array<i32>} : memref<2x16xf32, #tpu.memory_space<vmem>>, vector<2x16xf32>,
    %cst_22 = arith.constant 0.000000e+00 : f32
    %53 = vector.shape_cast %44 : vector<2x1xi1> to vector<2x1xi1>
    %54 = vector.broadcast %53 : vector<2x1xi1> to vector<2x16xi1>
    %55 = vector.broadcast %cst_22 : f32 to vector<2x16xf32>
    %56 = arith.select %54, %42, %55 : vector<2x16xi1>, vector<2x16xf32>
    %57 = arith.index_cast %arg0 : i32 to index
    %c0_23 = arith.constant 0 : index
    %c0_24 = arith.constant 0 : index
    %58 = vector.load %arg9[%57, %c0_23, %c0_24] : memref<8x2x32xf32, #tpu.memory_space<vmem>>, vector<1x2x16xf32>
    %59 = vector.shape_cast %58 : vector<1x2x16xf32> to vector<2x16xf32>
    %60 = vector.shape_cast %56 : vector<2x16xf32> to vector<1x2x16xf32>
    tpu.vector_store %arg9[%57, %c0_23, %c0_24], %60 {strides = array<i32>} : memref<8x2x32xf32, #tpu.memory_space<vmem>>, vector<1x2x16xf32>,
    %61 = arith.index_cast %3 : i32 to index
    %c0_25 = arith.constant 0 : index
    %c0_26 = arith.constant 0 : index
    %62 = vector.load %arg1[%61, %c0_25, %c0_26] : memref<8x2x32xf32, #tpu.memory_space<vmem>>, vector<1x2x32xf32>
    %63 = vector.shape_cast %62 : vector<1x2x32xf32> to vector<2x32xf32>
    %c0_27 = arith.constant 0 : index
    %c0_28 = arith.constant 0 : index
    %64 = vector.load %arg14[%c0_27, %c0_28] : memref<2x16xf32, #tpu.memory_space<vmem>>, vector<2x16xf32>
    %c0_29 = arith.constant 0 : index
    %c0_30 = arith.constant 0 : index
    %65 = vector.load %arg15[%c0_29, %c0_30] : memref<2x16xf32, #tpu.memory_space<vmem>>, vector<2x16xf32>
    %c0_31 = arith.constant 0 : index
    %c0_32 = arith.constant 0 : index
    %66 = vector.load %arg6[%c0_31, %c0_32] : memref<32x64xf32, #tpu.memory_space<vmem>>, vector<32x64xf32>
    %cst_33 = arith.constant dense<0.000000e+00> : vector<2x64xf32>
    %67 = tpu.matmul %63, %66, %cst_33 {dimension_numbers = #tpu.dot_dimension_numbers<[1], [0], [0], [1], [0, 0, 1, 1], [], []>} : vector<2x32xf32>, vector<32x64xf32>, vector<2x64xf32> -> vector<2x64xf32>
    %c0_34 = arith.constant 0 : index
    %c0_35 = arith.constant 0 : index
    %68 = vector.load %arg7[%c0_34, %c0_35] : memref<16x64xf32, #tpu.memory_space<vmem>>, vector<16x64xf32>
    %cst_36 = arith.constant dense<0.000000e+00> : vector<2x64xf32>
    %69 = tpu.matmul %64, %68, %cst_36 {dimension_numbers = #tpu.dot_dimension_numbers<[1], [0], [0], [1], [0, 0, 1, 1], [], []>} : vector<2x16xf32>, vector<16x64xf32>, vector<2x64xf32> -> vector<2x64xf32>
    %70 = arith.addf %67, %69 : vector<2x64xf32>
    %c0_37 = arith.constant 0 : index
    %c0_38 = arith.constant 0 : index
    %71 = vector.load %arg8[%c0_37, %c0_38] : memref<1x64xf32, #tpu.memory_space<vmem>>, vector<1x64xf32>
    %72 = vector.broadcast %71 : vector<1x64xf32> to vector<2x64xf32>
    %73 = arith.addf %70, %72 : vector<2x64xf32>
    %74 = vector.extract_strided_slice %73 {offsets = [0, 0], sizes = [2, 16], strides = [1, 1]} : vector<2x64xf32> to vector<2x16xf32>
    %75 = arith.negf %74 : vector<2x16xf32>
    %76 = math.exp %75 : vector<2x16xf32>
    %cst_39 = arith.constant 1.000000e+00 : f32
    %77 = vector.broadcast %cst_39 : f32 to vector<2x16xf32>
    %78 = arith.addf %77, %76 : vector<2x16xf32>
    %79 = arith.divf %77, %78 : vector<2x16xf32>
    %80 = vector.extract_strided_slice %73 {offsets = [0, 16], sizes = [2, 16], strides = [1, 1]} : vector<2x64xf32> to vector<2x16xf32>
    %81 = arith.negf %80 : vector<2x16xf32>
    %82 = math.exp %81 : vector<2x16xf32>
    %cst_40 = arith.constant 1.000000e+00 : f32
    %83 = vector.broadcast %cst_40 : f32 to vector<2x16xf32>
    %84 = arith.addf %83, %82 : vector<2x16xf32>
    %85 = arith.divf %83, %84 : vector<2x16xf32>
    %86 = vector.extract_strided_slice %73 {offsets = [0, 32], sizes = [2, 16], strides = [1, 1]} : vector<2x64xf32> to vector<2x16xf32>
    %87 = math.tanh %86 : vector<2x16xf32>
    %88 = vector.extract_strided_slice %73 {offsets = [0, 48], sizes = [2, 16], strides = [1, 1]} : vector<2x64xf32> to vector<2x16xf32>
    %89 = arith.negf %88 : vector<2x16xf32>
    %90 = math.exp %89 : vector<2x16xf32>
    %cst_41 = arith.constant 1.000000e+00 : f32
    %91 = vector.broadcast %cst_41 : f32 to vector<2x16xf32>
    %92 = arith.addf %91, %90 : vector<2x16xf32>
    %93 = arith.divf %91, %92 : vector<2x16xf32>
    %94 = arith.mulf %85, %65 : vector<2x16xf32>
    %95 = arith.mulf %79, %87 : vector<2x16xf32>
    %96 = arith.addf %94, %95 : vector<2x16xf32>
    %97 = math.tanh %96 : vector<2x16xf32>
    %98 = arith.mulf %93, %97 : vector<2x16xf32>
    %99 = vector.broadcast %3 : i32 to vector<2x1xi32>
    %100 = arith.cmpi sgt, %4, %99 : vector<2x1xi32>
    %101 = vector.shape_cast %100 : vector<2x1xi1> to vector<2x1xi1>
    %102 = vector.broadcast %101 : vector<2x1xi1> to vector<2x16xi1>
    %103 = arith.select %102, %98, %64 : vector<2x16xi1>, vector<2x16xf32>
    %c0_42 = arith.constant 0 : index
    %c0_43 = arith.constant 0 : index
    %104 = vector.load %arg14[%c0_42, %c0_43] : memref<2x16xf32, #tpu.memory_space<vmem>>, vector<2x16xf32>
    tpu.vector_store %arg14[%c0_42, %c0_43], %103 {strides = array<i32>} : memref<2x16xf32, #tpu.memory_space<vmem>>, vector<2x16xf32>,
    %105 = vector.shape_cast %100 : vector<2x1xi1> to vector<2x1xi1>
    %106 = vector.broadcast %105 : vector<2x1xi1> to vector<2x16xi1>
    %107 = arith.select %106, %96, %65 : vector<2x16xi1>, vector<2x16xf32>
    %c0_44 = arith.constant 0 : index
    %c0_45 = arith.constant 0 : index
    %108 = vector.load %arg15[%c0_44, %c0_45] : memref<2x16xf32, #tpu.memory_space<vmem>>, vector<2x16xf32>
    tpu.vector_store %arg15[%c0_44, %c0_45], %107 {strides = array<i32>} : memref<2x16xf32, #tpu.memory_space<vmem>>, vector<2x16xf32>,
    %cst_46 = arith.constant 0.000000e+00 : f32
    %109 = vector.shape_cast %100 : vector<2x1xi1> to vector<2x1xi1>
    %110 = vector.broadcast %109 : vector<2x1xi1> to vector<2x16xi1>
    %111 = vector.broadcast %cst_46 : f32 to vector<2x16xf32>
    %112 = arith.select %110, %98, %111 : vector<2x16xi1>, vector<2x16xf32>
    %113 = arith.index_cast %3 : i32 to index
    %c0_47 = arith.constant 0 : index
    %c16 = arith.constant 16 : index
    %114 = vector.load %arg9[%113, %c0_47, %c16] : memref<8x2x32xf32, #tpu.memory_space<vmem>>, vector<1x2x16xf32>
    %115 = vector.shape_cast %114 : vector<1x2x16xf32> to vector<2x16xf32>
    %116 = vector.shape_cast %112 : vector<2x16xf32> to vector<1x2x16xf32>
    tpu.vector_store %arg9[%113, %c0_47, %c16], %116 {strides = array<i32>} : memref<8x2x32xf32, #tpu.memory_space<vmem>>, vector<1x2x16xf32>,
    %c7_i32_48 = arith.constant 7 : i32
    %117 = arith.cmpi eq, %arg0, %c7_i32_48 : i32
    %118 = arith.extui %117 : i1 to i32
    %c0_i32_49 = arith.constant 0 : i32
    %119 = arith.cmpi ne, %118, %c0_i32_49 : i32
    scf.if %119 {
      %c0_50 = arith.constant 0 : index
      %c0_51 = arith.constant 0 : index
      %120 = vector.load %arg12[%c0_50, %c0_51] : memref<2x16xf32, #tpu.memory_space<vmem>>, vector<2x16xf32>
      %c0_52 = arith.constant 0 : index
      %c0_53 = arith.constant 0 : index
      %121 = vector.load %arg10[%c0_52, %c0_53] : memref<2x32xf32, #tpu.memory_space<vmem>>, vector<2x16xf32>
      tpu.vector_store %arg10[%c0_52, %c0_53], %120 {strides = array<i32>} : memref<2x32xf32, #tpu.memory_space<vmem>>, vector<2x16xf32>,
      %c0_54 = arith.constant 0 : index
      %c0_55 = arith.constant 0 : index
      %122 = vector.load %arg14[%c0_54, %c0_55] : memref<2x16xf32, #tpu.memory_space<vmem>>, vector<2x16xf32>
      %c0_56 = arith.constant 0 : index
      %c16_57 = arith.constant 16 : index
      %123 = vector.load %arg10[%c0_56, %c16_57] : memref<2x32xf32, #tpu.memory_space<vmem>>, vector<2x16xf32>
      tpu.vector_store %arg10[%c0_56, %c16_57], %122 {strides = array<i32>} : memref<2x32xf32, #tpu.memory_space<vmem>>, vector<2x16xf32>,
      %c0_58 = arith.constant 0 : index
      %c0_59 = arith.constant 0 : index
      %124 = vector.load %arg13[%c0_58, %c0_59] : memref<2x16xf32, #tpu.memory_space<vmem>>, vector<2x16xf32>
      %c0_60 = arith.constant 0 : index
      %c0_61 = arith.constant 0 : index
      %125 = vector.load %arg11[%c0_60, %c0_61] : memref<2x32xf32, #tpu.memory_space<vmem>>, vector<2x16xf32>
      tpu.vector_store %arg11[%c0_60, %c0_61], %124 {strides = array<i32>} : memref<2x32xf32, #tpu.memory_space<vmem>>, vector<2x16xf32>,
      %c0_62 = arith.constant 0 : index
      %c0_63 = arith.constant 0 : index
      %126 = vector.load %arg15[%c0_62, %c0_63] : memref<2x16xf32, #tpu.memory_space<vmem>>, vector<2x16xf32>
      %c0_64 = arith.constant 0 : index
      %c16_65 = arith.constant 16 : index
      %127 = vector.load %arg11[%c0_64, %c16_65] : memref<2x32xf32, #tpu.memory_space<vmem>>, vector<2x16xf32>
      tpu.vector_store %arg11[%c0_64, %c16_65], %126 {strides = array<i32>} : memref<2x32xf32, #tpu.memory_space<vmem>>, vector<2x16xf32>,
    } else {
    }
    return
  }
  func.func @transform_0(%arg0: i32) -> (i32, i32, i32) {
    %c0_i32 = arith.constant 0 : i32
    %c0_i32_0 = arith.constant 0 : i32
    %c0_i32_1 = arith.constant 0 : i32
    %c0_i32_2 = arith.constant 0 : i32
    return %c0_i32, %c0_i32_0, %c0_i32_1 : i32, i32, i32
  }
  func.func @transform_1(%arg0: i32) -> (i32, i32) {
    %c0_i32 = arith.constant 0 : i32
    %c0_i32_0 = arith.constant 0 : i32
    %c0_i32_1 = arith.constant 0 : i32
    return %c0_i32, %c0_i32_0 : i32, i32
  }
  func.func @transform_2(%arg0: i32) -> (i32, i32) {
    %c0_i32 = arith.constant 0 : i32
    %c0_i32_0 = arith.constant 0 : i32
    %c0_i32_1 = arith.constant 0 : i32
    return %c0_i32, %c0_i32_0 : i32, i32
  }
  func.func @transform_3(%arg0: i32) -> (i32, i32) {
    %c0_i32 = arith.constant 0 : i32
    %c0_i32_0 = arith.constant 0 : i32
    %c0_i32_1 = arith.constant 0 : i32
    return %c0_i32, %c0_i32_0 : i32, i32
  }
  func.func @transform_4(%arg0: i32) -> (i32, i32) {
    %c0_i32 = arith.constant 0 : i32
    %c0_i32_0 = arith.constant 0 : i32
    %c0_i32_1 = arith.constant 0 : i32
    return %c0_i32, %c0_i32_0 : i32, i32
  }
  func.func @transform_5(%arg0: i32) -> (i32, i32) {
    %c0_i32 = arith.constant 0 : i32
    %c0_i32_0 = arith.constant 0 : i32
    %c0_i32_1 = arith.constant 0 : i32
    return %c0_i32, %c0_i32_0 : i32, i32
  }
  func.func @transform_6(%arg0: i32) -> (i32, i32) {
    %c0_i32 = arith.constant 0 : i32
    %c0_i32_0 = arith.constant 0 : i32
    %c0_i32_1 = arith.constant 0 : i32
    return %c0_i32, %c0_i32_0 : i32, i32
  }
  func.func @transform_7(%arg0: i32) -> (i32, i32) {
    %c0_i32 = arith.constant 0 : i32
    %c0_i32_0 = arith.constant 0 : i32
    %c0_i32_1 = arith.constant 0 : i32
    return %c0_i32, %c0_i32_0 : i32, i32
  }
  func.func @transform_8(%arg0: i32) -> (i32, i32, i32) {
    %c0_i32 = arith.constant 0 : i32
    %c0_i32_0 = arith.constant 0 : i32
    %c0_i32_1 = arith.constant 0 : i32
    %c0_i32_2 = arith.constant 0 : i32
    return %c0_i32, %c0_i32_0, %c0_i32_1 : i32, i32, i32
  }
  func.func @transform_9(%arg0: i32) -> (i32, i32) {
    %c0_i32 = arith.constant 0 : i32
    %c0_i32_0 = arith.constant 0 : i32
    %c0_i32_1 = arith.constant 0 : i32
    return %c0_i32, %c0_i32_0 : i32, i32
  }
  func.func @transform_10(%arg0: i32) -> (i32, i32) {
    %c0_i32 = arith.constant 0 : i32
    %c0_i32_0 = arith.constant 0 : i32
    %c0_i32_1 = arith.constant 0 : i32
    return %c0_i32, %c0_i32_0 : i32, i32
  }
}

module attributes {stable_mosaic.version = 11 : i64} {
  func.func @kernel(%arg0: i32, %arg1: memref<1x2x16xf32, #tpu.memory_space<vmem>>, %arg2: memref<2x2x32xf32, #tpu.memory_space<vmem>>, %arg3: memref<2x2x32xf32, #tpu.memory_space<vmem>>, %arg4: memref<2x8x32xf32, #tpu.memory_space<vmem>>, %arg5: memref<2x8xf32, #tpu.memory_space<vmem>>, %arg6: memref<32x32xf32, #tpu.memory_space<vmem>>, %arg7: memref<32x32xf32, #tpu.memory_space<vmem>>, %arg8: memref<32x32xf32, #tpu.memory_space<vmem>>, %arg9: memref<1x32xf32, #tpu.memory_space<vmem>>, %arg10: memref<16x128xf32, #tpu.memory_space<vmem>>, %arg11: memref<32x128xf32, #tpu.memory_space<vmem>>, %arg12: memref<32x128xf32, #tpu.memory_space<vmem>>, %arg13: memref<1x128xf32, #tpu.memory_space<vmem>>, %arg14: memref<32x128xf32, #tpu.memory_space<vmem>>, %arg15: memref<32x128xf32, #tpu.memory_space<vmem>>, %arg16: memref<1x128xf32, #tpu.memory_space<vmem>>, %arg17: memref<1x2x32xf32, #tpu.memory_space<vmem>>, %arg18: memref<2x2x32xf32, #tpu.memory_space<vmem>>, %arg19: memref<2x2x32xf32, #tpu.memory_space<vmem>>, %arg20: memref<2x32xf32, #tpu.memory_space<vmem>>) attributes {dimension_semantics = [#tpu.dimension_semantics<arbitrary>], iteration_bounds = array<i64: 6>, scalar_prefetch = 0 : i64, scratch_operands = 3 : i64, tpu.core_type = #tpu.core_type<tc>, window_params = [{transform_indices = @transform_0, window_bounds = array<i64: 1, 2, 16>}, {pipeline_mode = #tpu.pipeline_mode<synchronous>, transform_indices = @transform_1, window_bounds = array<i64: 2, 2, 32>}, {pipeline_mode = #tpu.pipeline_mode<synchronous>, transform_indices = @transform_2, window_bounds = array<i64: 2, 2, 32>}, {pipeline_mode = #tpu.pipeline_mode<synchronous>, transform_indices = @transform_3, window_bounds = array<i64: 2, 8, 32>}, {pipeline_mode = #tpu.pipeline_mode<synchronous>, transform_indices = @transform_4, window_bounds = array<i64: 2, 8>}, {pipeline_mode = #tpu.pipeline_mode<synchronous>, transform_indices = @transform_5, window_bounds = array<i64: 32, 32>}, {pipeline_mode = #tpu.pipeline_mode<synchronous>, transform_indices = @transform_6, window_bounds = array<i64: 32, 32>}, {pipeline_mode = #tpu.pipeline_mode<synchronous>, transform_indices = @transform_7, window_bounds = array<i64: 32, 32>}, {pipeline_mode = #tpu.pipeline_mode<synchronous>, transform_indices = @transform_8, window_bounds = array<i64: 1, 32>}, {pipeline_mode = #tpu.pipeline_mode<synchronous>, transform_indices = @transform_9, window_bounds = array<i64: 16, 128>}, {pipeline_mode = #tpu.pipeline_mode<synchronous>, transform_indices = @transform_10, window_bounds = array<i64: 32, 128>}, {pipeline_mode = #tpu.pipeline_mode<synchronous>, transform_indices = @transform_11, window_bounds = array<i64: 32, 128>}, {pipeline_mode = #tpu.pipeline_mode<synchronous>, transform_indices = @transform_12, window_bounds = array<i64: 1, 128>}, {pipeline_mode = #tpu.pipeline_mode<synchronous>, transform_indices = @transform_13, window_bounds = array<i64: 32, 128>}, {pipeline_mode = #tpu.pipeline_mode<synchronous>, transform_indices = @transform_14, window_bounds = array<i64: 32, 128>}, {pipeline_mode = #tpu.pipeline_mode<synchronous>, transform_indices = @transform_15, window_bounds = array<i64: 1, 128>}, {transform_indices = @transform_16, window_bounds = array<i64: 1, 2, 32>}]} {
    %c0_i32 = arith.constant 0 : i32
    %0 = arith.cmpi eq, %arg0, %c0_i32 : i32
    %1 = arith.extui %0 : i1 to i32
    %c0_i32_0 = arith.constant 0 : i32
    %2 = arith.cmpi ne, %1, %c0_i32_0 : i32
    scf.if %2 {
      %c0_77 = arith.constant 0 : index
      %c0_78 = arith.constant 0 : index
      %c0_79 = arith.constant 0 : index
      %127 = vector.load %arg2[%c0_77, %c0_78, %c0_79] : memref<2x2x32xf32, #tpu.memory_space<vmem>>, vector<2x2x32xf32>
      %c0_80 = arith.constant 0 : index
      %c0_81 = arith.constant 0 : index
      %c0_82 = arith.constant 0 : index
      %128 = vector.load %arg18[%c0_80, %c0_81, %c0_82] : memref<2x2x32xf32, #tpu.memory_space<vmem>>, vector<2x2x32xf32>
      tpu.vector_store %arg18[%c0_80, %c0_81, %c0_82], %127 {strides = array<i32>} : memref<2x2x32xf32, #tpu.memory_space<vmem>>, vector<2x2x32xf32>,
      %c0_83 = arith.constant 0 : index
      %c0_84 = arith.constant 0 : index
      %c0_85 = arith.constant 0 : index
      %129 = vector.load %arg3[%c0_83, %c0_84, %c0_85] : memref<2x2x32xf32, #tpu.memory_space<vmem>>, vector<2x2x32xf32>
      %c0_86 = arith.constant 0 : index
      %c0_87 = arith.constant 0 : index
      %c0_88 = arith.constant 0 : index
      %130 = vector.load %arg19[%c0_86, %c0_87, %c0_88] : memref<2x2x32xf32, #tpu.memory_space<vmem>>, vector<2x2x32xf32>
      tpu.vector_store %arg19[%c0_86, %c0_87, %c0_88], %129 {strides = array<i32>} : memref<2x2x32xf32, #tpu.memory_space<vmem>>, vector<2x2x32xf32>,
      %cst_89 = arith.constant 0.000000e+00 : f32
      %131 = vector.broadcast %cst_89 : f32 to vector<2x32xf32>
      %c0_90 = arith.constant 0 : index
      %c0_91 = arith.constant 0 : index
      %132 = vector.load %arg20[%c0_90, %c0_91] : memref<2x32xf32, #tpu.memory_space<vmem>>, vector<2x32xf32>
      tpu.vector_store %arg20[%c0_90, %c0_91], %131 {strides = array<i32>} : memref<2x32xf32, #tpu.memory_space<vmem>>, vector<2x32xf32>,
    } else {
    }
    %c0 = arith.constant 0 : index
    %c0_1 = arith.constant 0 : index
    %c0_2 = arith.constant 0 : index
    %3 = vector.load %arg1[%c0, %c0_1, %c0_2] : memref<1x2x16xf32, #tpu.memory_space<vmem>>, vector<1x2x16xf32>
    %4 = vector.shape_cast %3 : vector<1x2x16xf32> to vector<2x16xf32>
    %c0_3 = arith.constant 0 : index
    %c0_4 = arith.constant 0 : index
    %5 = vector.load %arg20[%c0_3, %c0_4] : memref<2x32xf32, #tpu.memory_space<vmem>>, vector<2x32xf32>
    %c0_5 = arith.constant 0 : index
    %c0_6 = arith.constant 0 : index
    %6 = vector.load %arg10[%c0_5, %c0_6] : memref<16x128xf32, #tpu.memory_space<vmem>>, vector<16x128xf32>
    %cst = arith.constant dense<0.000000e+00> : vector<2x128xf32>
    %7 = tpu.matmul %4, %6, %cst {dimension_numbers = #tpu.dot_dimension_numbers<[1], [0], [0], [1], [0, 0, 1, 1], [], []>} : vector<2x16xf32>, vector<16x128xf32>, vector<2x128xf32> -> vector<2x128xf32>
    %c0_7 = arith.constant 0 : index
    %c0_8 = arith.constant 0 : index
    %8 = vector.load %arg11[%c0_7, %c0_8] : memref<32x128xf32, #tpu.memory_space<vmem>>, vector<32x128xf32>
    %cst_9 = arith.constant dense<0.000000e+00> : vector<2x128xf32>
    %9 = tpu.matmul %5, %8, %cst_9 {dimension_numbers = #tpu.dot_dimension_numbers<[1], [0], [0], [1], [0, 0, 1, 1], [], []>} : vector<2x32xf32>, vector<32x128xf32>, vector<2x128xf32> -> vector<2x128xf32>
    %10 = arith.addf %7, %9 : vector<2x128xf32>
    %c0_10 = arith.constant 0 : index
    %c0_11 = arith.constant 0 : index
    %c0_12 = arith.constant 0 : index
    %11 = vector.load %arg18[%c0_10, %c0_11, %c0_12] : memref<2x2x32xf32, #tpu.memory_space<vmem>>, vector<1x2x32xf32>
    %12 = vector.shape_cast %11 : vector<1x2x32xf32> to vector<2x32xf32>
    %c0_13 = arith.constant 0 : index
    %c0_14 = arith.constant 0 : index
    %13 = vector.load %arg12[%c0_13, %c0_14] : memref<32x128xf32, #tpu.memory_space<vmem>>, vector<32x128xf32>
    %cst_15 = arith.constant dense<0.000000e+00> : vector<2x128xf32>
    %14 = tpu.matmul %12, %13, %cst_15 {dimension_numbers = #tpu.dot_dimension_numbers<[1], [0], [0], [1], [0, 0, 1, 1], [], []>} : vector<2x32xf32>, vector<32x128xf32>, vector<2x128xf32> -> vector<2x128xf32>
    %15 = arith.addf %10, %14 : vector<2x128xf32>
    %c0_16 = arith.constant 0 : index
    %c0_17 = arith.constant 0 : index
    %16 = vector.load %arg13[%c0_16, %c0_17] : memref<1x128xf32, #tpu.memory_space<vmem>>, vector<1x128xf32>
    %17 = vector.broadcast %16 : vector<1x128xf32> to vector<2x128xf32>
    %18 = arith.addf %15, %17 : vector<2x128xf32>
    %c0_18 = arith.constant 0 : index
    %c0_19 = arith.constant 0 : index
    %c0_20 = arith.constant 0 : index
    %19 = vector.load %arg19[%c0_18, %c0_19, %c0_20] : memref<2x2x32xf32, #tpu.memory_space<vmem>>, vector<1x2x32xf32>
    %20 = vector.shape_cast %19 : vector<1x2x32xf32> to vector<2x32xf32>
    %21 = vector.extract_strided_slice %18 {offsets = [0, 0], sizes = [2, 32], strides = [1, 1]} : vector<2x128xf32> to vector<2x32xf32>
    %22 = arith.negf %21 : vector<2x32xf32>
    %23 = math.exp %22 : vector<2x32xf32>
    %cst_21 = arith.constant 1.000000e+00 : f32
    %24 = vector.broadcast %cst_21 : f32 to vector<2x32xf32>
    %25 = arith.addf %24, %23 : vector<2x32xf32>
    %26 = arith.divf %24, %25 : vector<2x32xf32>
    %27 = vector.extract_strided_slice %18 {offsets = [0, 32], sizes = [2, 32], strides = [1, 1]} : vector<2x128xf32> to vector<2x32xf32>
    %28 = arith.negf %27 : vector<2x32xf32>
    %29 = math.exp %28 : vector<2x32xf32>
    %cst_22 = arith.constant 1.000000e+00 : f32
    %30 = vector.broadcast %cst_22 : f32 to vector<2x32xf32>
    %31 = arith.addf %30, %29 : vector<2x32xf32>
    %32 = arith.divf %30, %31 : vector<2x32xf32>
    %33 = vector.extract_strided_slice %18 {offsets = [0, 64], sizes = [2, 32], strides = [1, 1]} : vector<2x128xf32> to vector<2x32xf32>
    %34 = math.tanh %33 : vector<2x32xf32>
    %35 = vector.extract_strided_slice %18 {offsets = [0, 96], sizes = [2, 32], strides = [1, 1]} : vector<2x128xf32> to vector<2x32xf32>
    %36 = arith.negf %35 : vector<2x32xf32>
    %37 = math.exp %36 : vector<2x32xf32>
    %cst_23 = arith.constant 1.000000e+00 : f32
    %38 = vector.broadcast %cst_23 : f32 to vector<2x32xf32>
    %39 = arith.addf %38, %37 : vector<2x32xf32>
    %40 = arith.divf %38, %39 : vector<2x32xf32>
    %41 = arith.mulf %32, %20 : vector<2x32xf32>
    %42 = arith.mulf %26, %34 : vector<2x32xf32>
    %43 = arith.addf %41, %42 : vector<2x32xf32>
    %44 = math.tanh %43 : vector<2x32xf32>
    %45 = arith.mulf %40, %44 : vector<2x32xf32>
    %c0_24 = arith.constant 0 : index
    %c0_25 = arith.constant 0 : index
    %c0_26 = arith.constant 0 : index
    %46 = vector.load %arg18[%c0_24, %c0_25, %c0_26] : memref<2x2x32xf32, #tpu.memory_space<vmem>>, vector<1x2x32xf32>
    %47 = vector.shape_cast %46 : vector<1x2x32xf32> to vector<2x32xf32>
    %48 = vector.shape_cast %45 : vector<2x32xf32> to vector<1x2x32xf32>
    tpu.vector_store %arg18[%c0_24, %c0_25, %c0_26], %48 {strides = array<i32>} : memref<2x2x32xf32, #tpu.memory_space<vmem>>, vector<1x2x32xf32>,
    %c0_27 = arith.constant 0 : index
    %c0_28 = arith.constant 0 : index
    %c0_29 = arith.constant 0 : index
    %49 = vector.load %arg19[%c0_27, %c0_28, %c0_29] : memref<2x2x32xf32, #tpu.memory_space<vmem>>, vector<1x2x32xf32>
    %50 = vector.shape_cast %49 : vector<1x2x32xf32> to vector<2x32xf32>
    %51 = vector.shape_cast %43 : vector<2x32xf32> to vector<1x2x32xf32>
    tpu.vector_store %arg19[%c0_27, %c0_28, %c0_29], %51 {strides = array<i32>} : memref<2x2x32xf32, #tpu.memory_space<vmem>>, vector<1x2x32xf32>,
    %c0_30 = arith.constant 0 : index
    %c0_31 = arith.constant 0 : index
    %52 = vector.load %arg14[%c0_30, %c0_31] : memref<32x128xf32, #tpu.memory_space<vmem>>, vector<32x128xf32>
    %cst_32 = arith.constant dense<0.000000e+00> : vector<2x128xf32>
    %53 = tpu.matmul %45, %52, %cst_32 {dimension_numbers = #tpu.dot_dimension_numbers<[1], [0], [0], [1], [0, 0, 1, 1], [], []>} : vector<2x32xf32>, vector<32x128xf32>, vector<2x128xf32> -> vector<2x128xf32>
    %c1 = arith.constant 1 : index
    %c0_33 = arith.constant 0 : index
    %c0_34 = arith.constant 0 : index
    %54 = vector.load %arg18[%c1, %c0_33, %c0_34] : memref<2x2x32xf32, #tpu.memory_space<vmem>>, vector<1x2x32xf32>
    %55 = vector.shape_cast %54 : vector<1x2x32xf32> to vector<2x32xf32>
    %c0_35 = arith.constant 0 : index
    %c0_36 = arith.constant 0 : index
    %56 = vector.load %arg15[%c0_35, %c0_36] : memref<32x128xf32, #tpu.memory_space<vmem>>, vector<32x128xf32>
    %cst_37 = arith.constant dense<0.000000e+00> : vector<2x128xf32>
    %57 = tpu.matmul %55, %56, %cst_37 {dimension_numbers = #tpu.dot_dimension_numbers<[1], [0], [0], [1], [0, 0, 1, 1], [], []>} : vector<2x32xf32>, vector<32x128xf32>, vector<2x128xf32> -> vector<2x128xf32>
    %58 = arith.addf %53, %57 : vector<2x128xf32>
    %c0_38 = arith.constant 0 : index
    %c0_39 = arith.constant 0 : index
    %59 = vector.load %arg16[%c0_38, %c0_39] : memref<1x128xf32, #tpu.memory_space<vmem>>, vector<1x128xf32>
    %60 = vector.broadcast %59 : vector<1x128xf32> to vector<2x128xf32>
    %61 = arith.addf %58, %60 : vector<2x128xf32>
    %c1_40 = arith.constant 1 : index
    %c0_41 = arith.constant 0 : index
    %c0_42 = arith.constant 0 : index
    %62 = vector.load %arg19[%c1_40, %c0_41, %c0_42] : memref<2x2x32xf32, #tpu.memory_space<vmem>>, vector<1x2x32xf32>
    %63 = vector.shape_cast %62 : vector<1x2x32xf32> to vector<2x32xf32>
    %64 = vector.extract_strided_slice %61 {offsets = [0, 0], sizes = [2, 32], strides = [1, 1]} : vector<2x128xf32> to vector<2x32xf32>
    %65 = arith.negf %64 : vector<2x32xf32>
    %66 = math.exp %65 : vector<2x32xf32>
    %cst_43 = arith.constant 1.000000e+00 : f32
    %67 = vector.broadcast %cst_43 : f32 to vector<2x32xf32>
    %68 = arith.addf %67, %66 : vector<2x32xf32>
    %69 = arith.divf %67, %68 : vector<2x32xf32>
    %70 = vector.extract_strided_slice %61 {offsets = [0, 32], sizes = [2, 32], strides = [1, 1]} : vector<2x128xf32> to vector<2x32xf32>
    %71 = arith.negf %70 : vector<2x32xf32>
    %72 = math.exp %71 : vector<2x32xf32>
    %cst_44 = arith.constant 1.000000e+00 : f32
    %73 = vector.broadcast %cst_44 : f32 to vector<2x32xf32>
    %74 = arith.addf %73, %72 : vector<2x32xf32>
    %75 = arith.divf %73, %74 : vector<2x32xf32>
    %76 = vector.extract_strided_slice %61 {offsets = [0, 64], sizes = [2, 32], strides = [1, 1]} : vector<2x128xf32> to vector<2x32xf32>
    %77 = math.tanh %76 : vector<2x32xf32>
    %78 = vector.extract_strided_slice %61 {offsets = [0, 96], sizes = [2, 32], strides = [1, 1]} : vector<2x128xf32> to vector<2x32xf32>
    %79 = arith.negf %78 : vector<2x32xf32>
    %80 = math.exp %79 : vector<2x32xf32>
    %cst_45 = arith.constant 1.000000e+00 : f32
    %81 = vector.broadcast %cst_45 : f32 to vector<2x32xf32>
    %82 = arith.addf %81, %80 : vector<2x32xf32>
    %83 = arith.divf %81, %82 : vector<2x32xf32>
    %84 = arith.mulf %75, %63 : vector<2x32xf32>
    %85 = arith.mulf %69, %77 : vector<2x32xf32>
    %86 = arith.addf %84, %85 : vector<2x32xf32>
    %87 = math.tanh %86 : vector<2x32xf32>
    %88 = arith.mulf %83, %87 : vector<2x32xf32>
    %c1_46 = arith.constant 1 : index
    %c0_47 = arith.constant 0 : index
    %c0_48 = arith.constant 0 : index
    %89 = vector.load %arg18[%c1_46, %c0_47, %c0_48] : memref<2x2x32xf32, #tpu.memory_space<vmem>>, vector<1x2x32xf32>
    %90 = vector.shape_cast %89 : vector<1x2x32xf32> to vector<2x32xf32>
    %91 = vector.shape_cast %88 : vector<2x32xf32> to vector<1x2x32xf32>
    tpu.vector_store %arg18[%c1_46, %c0_47, %c0_48], %91 {strides = array<i32>} : memref<2x2x32xf32, #tpu.memory_space<vmem>>, vector<1x2x32xf32>,
    %c1_49 = arith.constant 1 : index
    %c0_50 = arith.constant 0 : index
    %c0_51 = arith.constant 0 : index
    %92 = vector.load %arg19[%c1_49, %c0_50, %c0_51] : memref<2x2x32xf32, #tpu.memory_space<vmem>>, vector<1x2x32xf32>
    %93 = vector.shape_cast %92 : vector<1x2x32xf32> to vector<2x32xf32>
    %94 = vector.shape_cast %86 : vector<2x32xf32> to vector<1x2x32xf32>
    tpu.vector_store %arg19[%c1_49, %c0_50, %c0_51], %94 {strides = array<i32>} : memref<2x2x32xf32, #tpu.memory_space<vmem>>, vector<1x2x32xf32>,
    %c0_52 = arith.constant 0 : index
    %c0_53 = arith.constant 0 : index
    %c0_54 = arith.constant 0 : index
    %95 = vector.load %arg4[%c0_52, %c0_53, %c0_54] : memref<2x8x32xf32, #tpu.memory_space<vmem>>, vector<2x8x32xf32>
    %c0_55 = arith.constant 0 : index
    %c0_56 = arith.constant 0 : index
    %96 = vector.load %arg6[%c0_55, %c0_56] : memref<32x32xf32, #tpu.memory_space<vmem>>, vector<32x32xf32>
    %cst_57 = arith.constant dense<0.000000e+00> : vector<2x32xf32>
    %97 = tpu.matmul %88, %96, %cst_57 {dimension_numbers = #tpu.dot_dimension_numbers<[1], [0], [0], [1], [0, 0, 1, 1], [], []>} : vector<2x32xf32>, vector<32x32xf32>, vector<2x32xf32> -> vector<2x32xf32>
    %98 = vector.shape_cast %97 : vector<2x32xf32> to vector<2x1x32xf32>
    "tpu.trace_start"() <{level = 10 : i32, message = "bqh,bsh->bqs"}> : () -> ()
    %cst_58 = arith.constant dense<0.000000e+00> : vector<2x1x8xf32>
    %99 = tpu.matmul %98, %95, %cst_58 {dimension_numbers = #tpu.dot_dimension_numbers<[2], [2], [1], [1], [0, 0, 0, 1, 1, 1], [0], [0]>} : vector<2x1x32xf32>, vector<2x8x32xf32>, vector<2x1x8xf32> -> vector<2x1x8xf32>
    "tpu.trace_stop"() : () -> ()
    %c0_59 = arith.constant 0 : index
    %c0_60 = arith.constant 0 : index
    %100 = vector.load %arg5[%c0_59, %c0_60] : memref<2x8xf32, #tpu.memory_space<vmem>>, vector<2x8xf32>
    %101 = vector.shape_cast %100 : vector<2x8xf32> to vector<2x1x8xf32>
    %102 = arith.addf %99, %101 : vector<2x1x8xf32>
    %cst_61 = arith.constant dense<0xFF800000> : vector<2x1xf32>
    %103 = vector.multi_reduction <maximumf>, %102, %cst_61 [2] : vector<2x1x8xf32> to vector<2x1xf32>
    %104 = vector.shape_cast %103 : vector<2x1xf32> to vector<2x1x1xf32>
    %105 = vector.broadcast %104 : vector<2x1x1xf32> to vector<2x1x8xf32>
    %106 = arith.subf %102, %105 : vector<2x1x8xf32>
    %107 = math.exp %106 : vector<2x1x8xf32>
    %cst_62 = arith.constant dense<0.000000e+00> : vector<2x1xf32>
    %108 = vector.multi_reduction <add>, %107, %cst_62 [2] : vector<2x1x8xf32> to vector<2x1xf32>
    %109 = vector.shape_cast %108 : vector<2x1xf32> to vector<2x1x1xf32>
    %110 = vector.broadcast %109 : vector<2x1x1xf32> to vector<2x1x8xf32>
    %111 = arith.divf %107, %110 : vector<2x1x8xf32>
    "tpu.trace_start"() <{level = 10 : i32, message = "bqs,bsh->bqh"}> : () -> ()
    %cst_63 = arith.constant dense<0.000000e+00> : vector<2x1x32xf32>
    %112 = tpu.matmul %111, %95, %cst_63 {dimension_numbers = #tpu.dot_dimension_numbers<[2], [1], [1], [2], [0, 0, 0, 1, 1, 2], [0], [0]>} : vector<2x1x8xf32>, vector<2x8x32xf32>, vector<2x1x32xf32> -> vector<2x1x32xf32>
    "tpu.trace_stop"() : () -> ()
    %113 = vector.shape_cast %112 : vector<2x1x32xf32> to vector<2x32xf32>
    %c0_64 = arith.constant 0 : index
    %c0_65 = arith.constant 0 : index
    %114 = vector.load %arg7[%c0_64, %c0_65] : memref<32x32xf32, #tpu.memory_space<vmem>>, vector<32x32xf32>
    %cst_66 = arith.constant dense<0.000000e+00> : vector<2x32xf32>
    %115 = tpu.matmul %88, %114, %cst_66 {dimension_numbers = #tpu.dot_dimension_numbers<[1], [0], [0], [1], [0, 0, 1, 1], [], []>} : vector<2x32xf32>, vector<32x32xf32>, vector<2x32xf32> -> vector<2x32xf32>
    %c0_67 = arith.constant 0 : index
    %c0_68 = arith.constant 0 : index
    %116 = vector.load %arg8[%c0_67, %c0_68] : memref<32x32xf32, #tpu.memory_space<vmem>>, vector<32x32xf32>
    %cst_69 = arith.constant dense<0.000000e+00> : vector<2x32xf32>
    %117 = tpu.matmul %113, %116, %cst_69 {dimension_numbers = #tpu.dot_dimension_numbers<[1], [0], [0], [1], [0, 0, 1, 1], [], []>} : vector<2x32xf32>, vector<32x32xf32>, vector<2x32xf32> -> vector<2x32xf32>
    %118 = arith.addf %115, %117 : vector<2x32xf32>
    %c0_70 = arith.constant 0 : index
    %c0_71 = arith.constant 0 : index
    %119 = vector.load %arg9[%c0_70, %c0_71] : memref<1x32xf32, #tpu.memory_space<vmem>>, vector<1x32xf32>
    %120 = vector.broadcast %119 : vector<1x32xf32> to vector<2x32xf32>
    %121 = arith.addf %118, %120 : vector<2x32xf32>
    %122 = math.tanh %121 : vector<2x32xf32>
    %c0_72 = arith.constant 0 : index
    %c0_73 = arith.constant 0 : index
    %123 = vector.load %arg20[%c0_72, %c0_73] : memref<2x32xf32, #tpu.memory_space<vmem>>, vector<2x32xf32>
    tpu.vector_store %arg20[%c0_72, %c0_73], %122 {strides = array<i32>} : memref<2x32xf32, #tpu.memory_space<vmem>>, vector<2x32xf32>,
    %c0_74 = arith.constant 0 : index
    %c0_75 = arith.constant 0 : index
    %c0_76 = arith.constant 0 : index
    %124 = vector.load %arg17[%c0_74, %c0_75, %c0_76] : memref<1x2x32xf32, #tpu.memory_space<vmem>>, vector<1x2x32xf32>
    %125 = vector.shape_cast %124 : vector<1x2x32xf32> to vector<2x32xf32>
    %126 = vector.shape_cast %122 : vector<2x32xf32> to vector<1x2x32xf32>
    tpu.vector_store %arg17[%c0_74, %c0_75, %c0_76], %126 {strides = array<i32>} : memref<1x2x32xf32, #tpu.memory_space<vmem>>, vector<1x2x32xf32>,
    return
  }
  func.func @transform_0(%arg0: i32) -> (i32, i32, i32) {
    %c0_i32 = arith.constant 0 : i32
    %c0_i32_0 = arith.constant 0 : i32
    %c0_i32_1 = arith.constant 0 : i32
    return %arg0, %c0_i32, %c0_i32_0 : i32, i32, i32
  }
  func.func @transform_1(%arg0: i32) -> (i32, i32, i32) {
    %c0_i32 = arith.constant 0 : i32
    %c0_i32_0 = arith.constant 0 : i32
    %c0_i32_1 = arith.constant 0 : i32
    %c0_i32_2 = arith.constant 0 : i32
    return %c0_i32, %c0_i32_0, %c0_i32_1 : i32, i32, i32
  }
  func.func @transform_2(%arg0: i32) -> (i32, i32, i32) {
    %c0_i32 = arith.constant 0 : i32
    %c0_i32_0 = arith.constant 0 : i32
    %c0_i32_1 = arith.constant 0 : i32
    %c0_i32_2 = arith.constant 0 : i32
    return %c0_i32, %c0_i32_0, %c0_i32_1 : i32, i32, i32
  }
  func.func @transform_3(%arg0: i32) -> (i32, i32, i32) {
    %c0_i32 = arith.constant 0 : i32
    %c0_i32_0 = arith.constant 0 : i32
    %c0_i32_1 = arith.constant 0 : i32
    %c0_i32_2 = arith.constant 0 : i32
    return %c0_i32, %c0_i32_0, %c0_i32_1 : i32, i32, i32
  }
  func.func @transform_4(%arg0: i32) -> (i32, i32) {
    %c0_i32 = arith.constant 0 : i32
    %c0_i32_0 = arith.constant 0 : i32
    %c0_i32_1 = arith.constant 0 : i32
    return %c0_i32, %c0_i32_0 : i32, i32
  }
  func.func @transform_5(%arg0: i32) -> (i32, i32) {
    %c0_i32 = arith.constant 0 : i32
    %c0_i32_0 = arith.constant 0 : i32
    %c0_i32_1 = arith.constant 0 : i32
    return %c0_i32, %c0_i32_0 : i32, i32
  }
  func.func @transform_6(%arg0: i32) -> (i32, i32) {
    %c0_i32 = arith.constant 0 : i32
    %c0_i32_0 = arith.constant 0 : i32
    %c0_i32_1 = arith.constant 0 : i32
    return %c0_i32, %c0_i32_0 : i32, i32
  }
  func.func @transform_7(%arg0: i32) -> (i32, i32) {
    %c0_i32 = arith.constant 0 : i32
    %c0_i32_0 = arith.constant 0 : i32
    %c0_i32_1 = arith.constant 0 : i32
    return %c0_i32, %c0_i32_0 : i32, i32
  }
  func.func @transform_8(%arg0: i32) -> (i32, i32) {
    %c0_i32 = arith.constant 0 : i32
    %c0_i32_0 = arith.constant 0 : i32
    %c0_i32_1 = arith.constant 0 : i32
    return %c0_i32, %c0_i32_0 : i32, i32
  }
  func.func @transform_9(%arg0: i32) -> (i32, i32) {
    %c0_i32 = arith.constant 0 : i32
    %c0_i32_0 = arith.constant 0 : i32
    %c0_i32_1 = arith.constant 0 : i32
    return %c0_i32, %c0_i32_0 : i32, i32
  }
  func.func @transform_10(%arg0: i32) -> (i32, i32) {
    %c0_i32 = arith.constant 0 : i32
    %c0_i32_0 = arith.constant 0 : i32
    %c0_i32_1 = arith.constant 0 : i32
    return %c0_i32, %c0_i32_0 : i32, i32
  }
  func.func @transform_11(%arg0: i32) -> (i32, i32) {
    %c0_i32 = arith.constant 0 : i32
    %c0_i32_0 = arith.constant 0 : i32
    %c0_i32_1 = arith.constant 0 : i32
    return %c0_i32, %c0_i32_0 : i32, i32
  }
  func.func @transform_12(%arg0: i32) -> (i32, i32) {
    %c0_i32 = arith.constant 0 : i32
    %c0_i32_0 = arith.constant 0 : i32
    %c0_i32_1 = arith.constant 0 : i32
    return %c0_i32, %c0_i32_0 : i32, i32
  }
  func.func @transform_13(%arg0: i32) -> (i32, i32) {
    %c0_i32 = arith.constant 0 : i32
    %c0_i32_0 = arith.constant 0 : i32
    %c0_i32_1 = arith.constant 0 : i32
    return %c0_i32, %c0_i32_0 : i32, i32
  }
  func.func @transform_14(%arg0: i32) -> (i32, i32) {
    %c0_i32 = arith.constant 0 : i32
    %c0_i32_0 = arith.constant 0 : i32
    %c0_i32_1 = arith.constant 0 : i32
    return %c0_i32, %c0_i32_0 : i32, i32
  }
  func.func @transform_15(%arg0: i32) -> (i32, i32) {
    %c0_i32 = arith.constant 0 : i32
    %c0_i32_0 = arith.constant 0 : i32
    %c0_i32_1 = arith.constant 0 : i32
    return %c0_i32, %c0_i32_0 : i32, i32
  }
  func.func @transform_16(%arg0: i32) -> (i32, i32, i32) {
    %c0_i32 = arith.constant 0 : i32
    %c0_i32_0 = arith.constant 0 : i32
    %c0_i32_1 = arith.constant 0 : i32
    return %arg0, %c0_i32, %c0_i32_0 : i32, i32, i32
  }
}

module attributes {stable_mosaic.version = 11 : i64} {
  func.func @generator_kernel(%arg0: i32, %arg1: memref<16x32xf32, #tpu.memory_space<vmem>>, %arg2: memref<32x22xf32, #tpu.memory_space<vmem>>, %arg3: memref<1x22xf32, #tpu.memory_space<vmem>>, %arg4: memref<16x22xf32, #tpu.memory_space<vmem>>) attributes {dimension_semantics = [#tpu.dimension_semantics<parallel>], iteration_bounds = array<i64: 1>, scalar_prefetch = 0 : i64, scratch_operands = 0 : i64, tpu.core_type = #tpu.core_type<tc>, window_params = [{transform_indices = @transform_0, window_bounds = array<i64: 16, 32>}, {pipeline_mode = #tpu.pipeline_mode<synchronous>, transform_indices = @transform_1, window_bounds = array<i64: 32, 22>}, {pipeline_mode = #tpu.pipeline_mode<synchronous>, transform_indices = @transform_2, window_bounds = array<i64: 1, 22>}, {transform_indices = @transform_3, window_bounds = array<i64: 16, 22>}]} {
    %c0 = arith.constant 0 : index
    %c0_0 = arith.constant 0 : index
    %0 = vector.load %arg1[%c0, %c0_0] : memref<16x32xf32, #tpu.memory_space<vmem>>, vector<16x32xf32>
    %c0_1 = arith.constant 0 : index
    %c0_2 = arith.constant 0 : index
    %1 = vector.load %arg2[%c0_1, %c0_2] : memref<32x22xf32, #tpu.memory_space<vmem>>, vector<32x22xf32>
    %cst = arith.constant dense<0.000000e+00> : vector<16x22xf32>
    %2 = tpu.matmul %0, %1, %cst {dimension_numbers = #tpu.dot_dimension_numbers<[1], [0], [0], [1], [0, 0, 1, 1], [], []>} : vector<16x32xf32>, vector<32x22xf32>, vector<16x22xf32> -> vector<16x22xf32>
    %c0_3 = arith.constant 0 : index
    %c0_4 = arith.constant 0 : index
    %3 = vector.load %arg3[%c0_3, %c0_4] : memref<1x22xf32, #tpu.memory_space<vmem>>, vector<1x22xf32>
    %4 = vector.broadcast %3 : vector<1x22xf32> to vector<16x22xf32>
    %5 = arith.addf %2, %4 : vector<16x22xf32>
    %cst_5 = arith.constant dense<0xFF800000> : vector<16xf32>
    %6 = vector.multi_reduction <maximumf>, %5, %cst_5 [1] : vector<16x22xf32> to vector<16xf32>
    %7 = vector.shape_cast %6 : vector<16xf32> to vector<16x1xf32>
    %8 = vector.broadcast %7 : vector<16x1xf32> to vector<16x22xf32>
    %9 = arith.subf %5, %8 : vector<16x22xf32>
    %10 = math.exp %9 : vector<16x22xf32>
    %cst_6 = arith.constant dense<0.000000e+00> : vector<16xf32>
    %11 = vector.multi_reduction <add>, %10, %cst_6 [1] : vector<16x22xf32> to vector<16xf32>
    %12 = vector.shape_cast %11 : vector<16xf32> to vector<16x1xf32>
    %13 = math.log %12 : vector<16x1xf32>
    %14 = vector.broadcast %13 : vector<16x1xf32> to vector<16x22xf32>
    %15 = arith.subf %9, %14 : vector<16x22xf32>
    %c0_7 = arith.constant 0 : index
    %c0_8 = arith.constant 0 : index
    %16 = vector.load %arg4[%c0_7, %c0_8] : memref<16x22xf32, #tpu.memory_space<vmem>>, vector<16x22xf32>
    tpu.vector_store %arg4[%c0_7, %c0_8], %15 {strides = array<i32>} : memref<16x22xf32, #tpu.memory_space<vmem>>, vector<16x22xf32>,
    return
  }
  func.func @transform_0(%arg0: i32) -> (i32, i32) {
    %c0_i32 = arith.constant 0 : i32
    %c0_i32_0 = arith.constant 0 : i32
    return %arg0, %c0_i32 : i32, i32
  }
  func.func @transform_1(%arg0: i32) -> (i32, i32) {
    %c0_i32 = arith.constant 0 : i32
    %c0_i32_0 = arith.constant 0 : i32
    %c0_i32_1 = arith.constant 0 : i32
    return %c0_i32, %c0_i32_0 : i32, i32
  }
  func.func @transform_2(%arg0: i32) -> (i32, i32) {
    %c0_i32 = arith.constant 0 : i32
    %c0_i32_0 = arith.constant 0 : i32
    %c0_i32_1 = arith.constant 0 : i32
    return %c0_i32, %c0_i32_0 : i32, i32
  }
  func.func @transform_3(%arg0: i32) -> (i32, i32) {
    %c0_i32 = arith.constant 0 : i32
    %c0_i32_0 = arith.constant 0 : i32
    return %arg0, %c0_i32 : i32, i32
  }
}

</mosaic_0001>

<bundles_post_ra>
// kernel: seq2seq_forward.7
= control target key start
LH: loop header
LB: loop body
LE: loop exit
PB: predicated region body
PF: predicated region fallthrough
CT: control target
= control target key end

     0   :  { %vm24_vm0 = vcmask 261120   ;;  %vm54_vm1 = vcmask 179200   ;;  %s153_s1 = inlined_call_operand.vmem [shape: f32[32,22], index: 1, kind: input, shape index: {}]   ;;  %s154_s2 = inlined_call_operand.vmem [shape: f32[1,22], index: 2, kind: input, shape index: {}]   ;;  %s155_s0 = inlined_call_operand.vmem [shape: f32[16,32], index: 0, kind: input, shape index: {}]   ;;  %s156_s3 = inlined_call_operand.vmem [shape: f32[16,22], index: 3, kind: output, shape index: {}]  }
   0x1   :  { %v19_v0 = vld [vmem:[%s153_s1 + $0x18] sm:$0xff]  ;;  %v18_v1 = vld [vmem:[%s153_s1 + $0x10] sm:$0xff]  ;;  %v17_v2 = vld [vmem:[%s153_s1 + $0x8] sm:$0xff] }
   0x2   :  { %43 = vmatpush.msra.mxu0 %v19_v0  ;;  %87 = vmatpush.msra.mxu1 %v19_v0  ;;  %v16_v3 = vld [vmem:[%s153_s1] sm:$0xff]  ;;  %v15_v5 = vld [vmem:[%s155_s0 + $0x8] sm:$0xff] }
   0x3   :  { %v14_v4 = vld [vmem:[%s155_s0] sm:$0xff] }
   0x4   :  { %44 = vmatpush.msra.mxu0 %v18_v1  ;;  %88 = vmatpush.msra.mxu1 %v18_v1  ;;  %v91_v6 = vld [vmem:[%s154_s2] ss:$0 sm:$0xff] }
   0x6   :  { %45 = vmatpush.msra.mxu0 %v17_v2  ;;  %89 = vmatpush.msra.mxu1 %v17_v2 }
   0x8   :  { %46 = vmatpush.msra.mxu0 %v16_v3  ;;  %90 = vmatpush.msra.mxu1 %v16_v3 }
   0x9   :  { %85 = vmatmul.msk.f32.vlgmr.msra.gmra.mxu0 %vm24_vm0, %v14_v4  ;;  %86 = vmatmul.msk.f32.vlgmr.msra.gmra.mxu1 %vm24_vm0, %v15_v5 }
  0x86   :  { %v48_v7 = vpop.f32.mrf.mxu0  ;;  %v51_v9 = vpop.f32.mrf.mxu1 }
  0x87   :  { %v49_v8 = vadd.f32 %v91_v6, %v48_v7  ;;  %v52_v11 = vadd.f32 %v91_v6, %v51_v9 }
  0x89   :  { %v55_v10 = vsel %vm54_vm1, %v49_v8, -inf  ;;  %v58_v12 = vsel %vm54_vm1, %v52_v11, -inf }
  0x8a   :  { %56 = vmax.xlane.f32.xlu0 %v55_v10 }
  0x92   :  { %59 = vmax.xlane.f32.xlu0 %v58_v12 }
  0xfd   :  { %v57_v13 = vpop.xlane.xlu0 %56 }
  0xfe   :  { %v61_v14 = vsub.f32 %v49_v8, %v57_v13 }
 0x100   :  { %v63_v15 = vmul.f32 1.442695, %v61_v14 }
 0x102   :  { %92 = vpow2.f32 %v63_v15 }
 0x105   :  { %v60_v16 = vpop.xlane.xlu0 %59 }
 0x106   :  { %v62_v17 = vsub.f32 %v52_v11, %v60_v16 }
 0x108   :  { %v93_v18 = vpop.eup %92  ;;  %v65_v19 = vmul.f32 1.442695, %v62_v17 }
 0x109   :  { %v67_v20 = vsel %vm54_vm1, %v93_v18, 0.0 }
 0x10a   :  { %94 = vpow2.f32 %v65_v19  ;;  %68 = vadd.xlane.f32.xlu1 %v67_v20 }
 0x110   :  { %v95_v21 = vpop.eup %94 }
 0x111   :  { %v70_v22 = vsel %vm54_vm1, %v95_v21, 0.0 }
 0x112   :  { %71 = vadd.xlane.f32.xlu1 %v70_v22 }
 0x17d   :  { %v69_v23 = vpop.xlane.xlu1 %68 }
 0x17e   :  { %96 = vlog2.f32 %v69_v23 }
 0x184   :  { %v97_v24 = vpop.eup %96 }
 0x185   :  { %v74_v25 = vmul.f32 0.6931472, %v97_v24  ;;  %v72_v26 = vpop.xlane.xlu1 %71 }
 0x186   :  { %98 = vlog2.f32 %v72_v26 }
 0x187   :  { %v77_v27 = vsub.f32 %v61_v14, %v74_v25 }
 0x189   :  { %79 = vst.msk [vmem:[%s156_s3] sm:$0xff] %vm54_vm1, %v77_v27 }
 0x18c   :  { %v99_v28 = vpop.eup %98 }
 0x18d   :  { %v76_v29 = vmul.f32 0.6931472, %v99_v28 }
 0x18f   :  { %v78_v30 = vsub.f32 %v62_v17, %v76_v29 }
 0x191   :  { %80 = vst.msk [vmem:[%s156_s3 + $0x8] sm:$0xff] %vm54_vm1, %v78_v30 }

// kernel: seq2seq_forward.5
= control target key start
LH: loop header
LB: loop body
LE: loop exit
PB: predicated region body
PF: predicated region fallthrough
CT: control target
= control target key end

     0   :  { %s779_s13 = smov 0   ;;  %s911_s0 = inlined_call_operand.vmem [shape: f32[8,2,32], index: 0, kind: input, shape index: {}]   ;;  %s912_s1 = inlined_call_operand.vmem [shape: s32[2,1], index: 1, kind: input, shape index: {}]   ;;  %s913_s2 = inlined_call_operand.vmem [shape: f32[32,64], index: 2, kind: input, shape index: {}]   ;;  %s914_s3 = inlined_call_operand.vmem [shape: f32[16,64], index: 3, kind: input, shape index: {}]   ;;  %s915_s4 = inlined_call_operand.vmem [shape: f32[1,64], index: 4, kind: input, shape index: {}]   ;;  %s916_s5 = inlined_call_operand.vmem [shape: f32[32,64], index: 5, kind: input, shape index: {}]   ;;  %s917_s6 = inlined_call_operand.vmem [shape: f32[16,64], index: 6, kind: input, shape index: {}]   ;;  %s918_s7 = inlined_call_operand.vmem [shape: f32[1,64], index: 7, kind: input, shape index: {}]   ;;  %s919_s8 = inlined_call_operand.vmem [shape: f32[8,2,32], index: 8, kind: output, shape index: {0}]   ;;  %s920_s9 = inlined_call_operand.vmem [shape: f32[2,32], index: 9, kind: output, shape index: {1}]   ;;  %s921_s10 = inlined_call_operand.vmem [shape: f32[2,32], index: 10, kind: output, shape index: {2}]  }
   0x1 LB: > { %s785_s14 = sadd.s32 4294967295, %s713_s13   ;;  %p657_p0 = scmp.ge.s32.totalorder %s713_s13, 1  ;;  %s713_s13 = sphi %s779_s13, %s21_s13  }
   0x2   : > { %p292_p1 = scmp.lt.s32.totalorder %s713_s13, 9 }
   0x4   : > { %p293_p2 = pnand %p657_p0, %p292_p1 }
   0x5   : > { %p658_p3 = scmp.ne.s32.totalorder (!%p293_p2), %s785_s14, 0 }
   0x6   : > { %296 = sbr.rel (%p293_p2) target bundleno = 756 (0x2f4), region = 52 }
   0xb   : > { %323 = sbr.rel (%p658_p3) target bundleno = 21 (0x15), region = 56 }
  0x10   : > { %vm324_vm0 = vcmask 123904   ;;  %v715_v0 = vmov 0.0  }
  0x11   : > { %325 = vst.msk [vmem:[#allocation2] sm:$0x3] %vm324_vm0, %v715_v0 }
  0x12   : > { %326 = vst.msk [vmem:[#allocation3] sm:$0x3] %vm324_vm0, %v715_v0 }
  0x13   : > { %327 = vst.msk [vmem:[#allocation4] sm:$0x3] %vm324_vm0, %v715_v0 }
  0x14   : > { %328 = vst.msk [vmem:[#allocation5] sm:$0x3] %vm324_vm0, %v715_v0 }
  0x15 PF: > { %v339_v1 = vld [vmem:[%s913_s2 + $0x18] sm:$0xff]  ;;  %v338_v2 = vld [vmem:[%s913_s2 + $0x10] sm:$0xff]  ;;  %s659_s21 = sshll.u32 %s785_s14, 1  ;;  %v341_v4 = vld [vmem:[%s914_s3 + $0x8] sm:$0xff]  ;;  %s329_s26 = ssub.s32 7, %s785_s14  ;;  %vm342_vm1 = vcmask 130048   ;;  %v436_v29 = vstv %s785_s14 }
  0x16   : > { %v474_v3 = vld [vmem:[%s916_s5 + $0x18] sm:$0xff]  ;;  %382 = vmatpush.msra.mxu1 %v339_v1  ;;  %v473_v5 = vld [vmem:[%s916_s5 + $0x10] sm:$0xff]  ;;  %360 = vmatpush.msra.mxu0 %v341_v4  ;;  %v337_v6 = vld [vmem:[%s913_s2 + $0x8] sm:$0xff]  ;;  %s332_s17 = scalar_lea.vmem %s911_s0, %s659_s21  ;;  %s823_s18 = sshll.u32 %s329_s26, 1  ;;  %vm366_vm2 = vcmask 261120   ;;  %v717_v30 = vmov 0  }
  0x17   : > { %515 = vmatpush.msra.mxu3 %v474_v3  ;;  %v340_v7 = vld [vmem:[%s914_s3] sm:$0xff]  ;;  %v476_v8 = vld [vmem:[%s917_s6 + $0x8] sm:$0xff]  ;;  %s467_s24 = scalar_lea.vmem %s911_s0, %s823_s18  ;;  %s716_s12 = smov 16   ;;  %687 = vset.pattern.permute.xlu1 %v717_v30  ;;  %vm451_vm15 = vcmask 123904   ;;  %vm597_vm0 = vcmask 255104  }
  0x18   : > { %383 = vmatpush.msra.mxu1 %v338_v2  ;;  %v472_v9 = vld [vmem:[%s916_s5 + $0x8] sm:$0xff]  ;;  %v334_v10 = vld [vmem:[#allocation2] sm:$0x3]  ;;  %361 = vmatpush.msra.mxu0 %v340_v7  ;;  %s718_s23 = smov 96   ;;  %s720_s25 = smov 32  }
  0x19   : > { %516 = vmatpush.msra.mxu3 %v473_v5  ;;  %v336_v11 = vld [vmem:[%s913_s2] sm:$0xff]  ;;  %494 = vmatpush.msra.mxu2 %v476_v8  ;;  %s721_s27 = smov 112   ;;  %s464_s30 = scalar_lea.vmem %s919_s8, %s659_s21 }
  0x1a   : > { %v475_v12 = vld [vmem:[%s917_s6] sm:$0xff]  ;;  %384 = vmatpush.msra.mxu1 %v337_v6  ;;  %660 = vmatmul.msk.f32.vlgmr.msra.gmra.mxu0 %vm342_vm1, %v334_v10  ;;  %s596_s15 = scalar_lea.vmem %s919_s8, %s823_s18  ;;  %p667_p4 = scmp.ne.s32.totalorder %s785_s14, 7 }
  0x1b   : > { %v471_v13 = vld [vmem:[%s916_s5] sm:$0xff]  ;;  %517 = vmatpush.msra.mxu3 %v472_v9  ;;  %495 = vmatpush.msra.mxu2 %v475_v12  ;;  %s723_s16 = smov (!%p667_p4), 16  }
  0x1c   : > { %v333_v14 = vld [vmem:[%s332_s17] sm:$0x3]  ;;  %v841_v15 = vld [vmem:[#allocation4] sm:$0x3]  ;;  %v335_v17 = vld [vmem:[#allocation3] sm:$0x3]  ;;  %385 = vmatpush.msra.mxu1 %v336_v11  ;;  %688 = vset.pattern.permute.xlu0 %v717_v30 }
  0x1d   : > { %v468_v16 = vld [vmem:[%s467_s24] sm:$0x3]  ;;  %518 = vmatpush.msra.mxu3 %v471_v13  ;;  %661 = vmatmul.msk.f32.vlgmr.msra.gmra.mxu1 %vm366_vm2, %v333_v14  ;;  %v470_v18 = vld [vmem:[#allocation5] sm:$0x3]  ;;  %s719_s24 = smov 48  }
  0x1e   : > { %664 = vmatmul.msk.f32.vlgmr.msra.gmra.mxu2 %vm342_vm1, %v841_v15  ;;  %665 = vmatmul.msk.f32.vlgmr.msra.gmra.mxu3 %vm366_vm2, %v468_v16  ;;  %v689_v20 = vld [vmem:[%s915_s4] ss:$0 sm:$0xff] }
  0x1f   : > { %416 = vrot.lane.b32.xlu1 %v335_v17, %s716_s12  ;;  %v690_v25 = vld [vmem:[%s918_s7] ss:$0 sm:$0xff] }
  0x20   : > { %v857_v28 = vld [vmem:[%s912_s1] sm:$0x3] }
  0x21   : > { %vm437_vm3 = vcmp.gt.s32.totalorder %v857_v28, %v436_v29 }
  0x22   : > { %v438_v32 = vsel %vm437_vm3, 1, %v717_v30 }
  0x27   : > { %549 = vrot.lane.b32.xlu1 %v470_v18, %s716_s12 }
  0x2f   : > { %440 = vperm.xlu1 %687, %v438_v32  }
  0x37   : > { %443 = vrot.lane.b32.xlu1 %v334_v10, %s719_s24  ;;  %v569_v10 = vstv %s329_s26  ;;  %s722_s26 = smov 80  }
  0x38   : > { %vm570_vm12 = vcmp.gt.s32.totalorder %v857_v28, %v569_v10 }
  0x39   : > { %v571_v11 = vsel %vm570_vm12, 1, %v717_v30 }
  0x91   : > { %v417_v1 = vpop.permute.xlu1 %416 }
  0x97   : > { %v363_v19 = vpop.f32.mrf.mxu0 }
  0x99   : > { %v550_v5 = vpop.permute.xlu1 %549 }
  0x9a   : > { %v387_v21 = vpop.f32.mrf.mxu1 }
  0x9b   : > { %v388_v22 = vadd.f32 %v387_v21, %v363_v19 }
  0x9d   : > { %v394_v23 = vadd.f32 %v689_v20, %v388_v22 }
  0x9f   : > { %691 = vtanh.f32 %v394_v23  ;;  %v662_v35 = vmul.f32 -1.442695, %v394_v23 }
  0xa1   : > { %v497_v24 = vpop.f32.mrf.mxu2  ;;  %v520_v26 = vpop.f32.mrf.mxu3 }
  0xa2   : > { %v521_v27 = vadd.f32 %v520_v26, %v497_v24  ;;  %v441_v13 = vpop.permute.xlu1 %440 }
  0xa3   : > { %vm442_vm13 = vcmp.eq.s32.totalorder %v441_v13, 1 }
  0xa4   : > { %v527_v31 = vadd.f32 %v690_v25, %v521_v27 }
  0xa5   : > { %v692_v33 = vpop.eup %691 }
  0xa6   : > { %693 = vtanh.f32 %v527_v31  ;;  %421 = vrot.lane.b32.xlu0 %v692_v33, %s718_s23  ;;  %v666_v36 = vmul.f32 -1.442695, %v527_v31 }
  0xa7   : > { %695 = vpow2.f32 %v662_v35 }
  0xa8   : > { %697 = vpow2.f32 %v666_v36 }
  0xaa   : > { %v444_v18 = vpop.permute.xlu1 %443 }
  0xac   : > { %v694_v34 = vpop.eup %693 }
  0xad   : > { %v696_v37 = vpop.eup %695 }
  0xae   : > { %554 = vrot.lane.b32.xlu0 %v694_v34, %s718_s23  ;;  %v398_v38 = vadd.f32 1.0, %v696_v37  ;;  %v698_v39 = vpop.eup %697 }
  0xaf   : > { %v531_v40 = vadd.f32 1.0, %v698_v39 }
  0xb0   : > { %699 = vrcp.f32 %v398_v38  ;;  %v410_v49 = vand.u32 2147483648, %v398_v38  ;;  %vm404_vm5 = vweird.f32 %v398_v38  ;;  %v408_v50 = vand.u32 2147483647, %v398_v38 }
  0xb1   : > { %701 = vrcp.f32 %v531_v40  ;;  %vm537_vm8 = vweird.f32 %v531_v40  ;;  %v543_v55 = vand.u32 2147483648, %v531_v40  ;;  %v541_v58 = vand.u32 2147483647, %v531_v40 }
  0xb2   : > { %v411_v53 = vor.u32 1.1754944e-38, %v410_v49  ;;  %vm409_vm7 = vcmp.eq.f32.partialorder %v408_v50, 8.507059e+37 }
  0xb3   : > { %v544_v60 = vor.u32 1.1754944e-38, %v543_v55  ;;  %vm542_vm11 = vcmp.eq.f32.partialorder %v541_v58, 8.507059e+37 }
  0xb6   : > { %v700_v41 = vpop.eup %699 }
  0xb7   : > { %v400_v42 = vmul.f32 %v700_v41, %v398_v38  ;;  %v702_v44 = vpop.eup %701  ;;  %vm405_vm4 = vweird.f32 %v700_v41 }
  0xb8   : > { %v533_v46 = vmul.f32 %v702_v44, %v531_v40  ;;  %vm406_vm6 = vmor %vm404_vm5, %vm405_vm4  ;;  %vm538_vm9 = vweird.f32 %v702_v44 }
  0xb9   : > { %v401_v43 = vsub.f32 1.0, %v400_v42  ;;  %vm539_vm10 = vmor %vm537_vm8, %vm538_vm9 }
  0xba   : > { %v534_v48 = vsub.f32 1.0, %v533_v46 }
  0xbb   : > { %v402_v45 = vmul.f32 %v700_v41, %v401_v43 }
  0xbc   : > { %v535_v52 = vmul.f32 %v702_v44, %v534_v48 }
  0xbd   : > { %v403_v47 = vadd.f32 %v700_v41, %v402_v45 }
  0xbe   : > { %v536_v57 = vadd.f32 %v702_v44, %v535_v52 }
  0xbf   : > { %v407_v51 = vsel %vm406_vm6, %v700_v41, %v403_v47 }
  0xc0   : > { %v412_v54 = vsel %vm409_vm7, %v411_v53, %v407_v51  ;;  %v540_v61 = vsel %vm539_vm10, %v702_v44, %v536_v57 }
  0xc1   : > { %v545_v62 = vsel %vm542_vm11, %v544_v60, %v540_v61  ;;  %v419_v2 = vmul.f32 %v417_v1, %v412_v54 }
  0xc2   : > { %v552_v6 = vmul.f32 %v550_v5, %v545_v62 }
 0x118   : > { %v422_v56 = vpop.permute.xlu0 %421 }
 0x119   : > { %v424_v59 = vmul.f32 %v422_v56, %v412_v54 }
 0x11b   : > { %426 = vrot.lane.b32.xlu2 %v424_v59, %s716_s12 }
 0x120   : > { %v555_v63 = vpop.permute.xlu0 %554 }
 0x121   : > { %v557_v0 = vmul.f32 %v555_v63, %v545_v62 }
 0x123   : > { %559 = vrot.lane.b32.xlu2 %v557_v0, %s716_s12 }
 0x175   : > { %v427_v3 = vpop.permute.xlu2 %426 }
 0x176   : > { %v429_v4 = vadd.f32 %v427_v3, %v419_v2 }
 0x178   : > { %703 = vtanh.f32 %v429_v4  ;;  %v453_v14 = vsel %vm442_vm13, %v429_v4, %v417_v1 }
 0x17d   : > { %v560_v7 = vpop.permute.xlu2 %559 }
 0x17e   : > { %v704_v8 = vpop.eup %703  ;;  %v562_v9 = vadd.f32 %v560_v7, %v552_v6 }
 0x17f   : > { %432 = vrot.lane.b32.xlu0 %v704_v8, %s720_s25 }
 0x180   : > { %705 = vtanh.f32 %v562_v9 }
 0x186   : > { %v706_v12 = vpop.eup %705 }
 0x187   : > { %573 = vperm.xlu0 %688, %v571_v11   ;;  %565 = vrot.lane.b32.xlu2 %v706_v12, %s720_s25 }
 0x18f   : > { %455 = vrot.lane.b32.xlu0 %v453_v14, %s721_s27  ;;  %576 = vrot.lane.b32.xlu2 %v841_v15, %s719_s24 }
 0x1e1   : > { %v566_v16 = vpop.permute.xlu2 %565 }
 0x1e2   : > { %v568_v23 = vmul.f32 %v566_v16, %v545_v62 }
 0x1e9   : > { %v577_v22 = vpop.permute.xlu2 %576 }
 0x1f1   : > { %v433_v17 = vpop.permute.xlu0 %432 }
 0x1f2   : > { %v435_v19 = vmul.f32 %v433_v17, %v412_v54 }
 0x1f4   : > { %v459_v20 = vsel %vm442_vm13, %v435_v19, 0.0  ;;  %v446_v21 = vsel %vm442_vm13, %v435_v19, %v444_v18 }
 0x1f5   : > { %461 = vrot.lane.b32.xlu1 %v459_v20, %s722_s26  ;;  %448 = vrot.lane.b32.xlu2 %v446_v21, %s722_s26 }
 0x1f9   : > { %v574_v24 = vpop.permute.xlu0 %573 }
 0x1fa   : > { %vm575_vm14 = vcmp.eq.s32.totalorder %v574_v24, 1 }
 0x1fb   : > { %v591_v25 = vsel %vm575_vm14, %v568_v23, 0.0  ;;  %v585_v26 = vsel %vm575_vm14, %v562_v9, %v550_v5  ;;  %v579_v27 = vsel %vm575_vm14, %v568_v23, %v577_v22 }
 0x1fc   : > { %593 = vrot.lane.b32.xlu0 %v591_v25, %s718_s23 }
 0x1fd   : > { %587 = vrot.lane.b32.xlu2 %v585_v26, %s721_s27  ;;  %581 = vrot.lane.b32.xlu1 %v579_v27, %s722_s26 }
 0x201   : > { %v456_v15 = vpop.permute.xlu0 %455 }
 0x202   : > { %458 = vst.msk [vmem:[#allocation3] sm:$0x3] %vm451_vm15, %v456_v15 }
 0x24f   : > { %v449_v28 = vpop.permute.xlu2 %448 }
 0x250   : > { %452 = vst.msk [vmem:[#allocation2] sm:$0x3] %vm451_vm15, %v449_v28 }
 0x257   : > { %v588_v29 = vpop.permute.xlu2 %587 }
 0x258   : > { %590 = vst.msk [vmem:[#allocation5] sm:$0x3] %vm451_vm15, %v588_v29 }
 0x267   : > { %v462_v30 = vpop.permute.xlu1 %461 }
 0x268   : > { %465 = vst.msk [vmem:[%s464_s30] sm:$0x3] %vm451_vm15, %v462_v30 }
 0x26c   : > { %602 = sbr.rel (%p667_p4) target bundleno = 756 (0x2f4), region = 60 }
 0x26e   : > { %v594_v31 = vpop.permute.xlu0 %593 }
 0x26f   : > { %598 = vst.msk [vmem:[%s596_s15] sm:$0x3] %vm597_vm0, %v594_v31  ;;  %v582_v32 = vpop.permute.xlu1 %581 }
 0x270   : > { %584 = vst.msk [vmem:[#allocation4] sm:$0x3] %vm451_vm15, %v582_v32 }
 0x271   : > { %v613_v34 = vld [vmem:[#allocation5] sm:$0x3]  ;;  %v603_v35 = vld [vmem:[#allocation2] sm:$0x3]  ;;  %v611_v36 = vld [vmem:[#allocation3] sm:$0x3] }
 0x272   : > { %604 = vst.msk [vmem:[%s920_s9] sm:$0x3] %vm451_vm15, %v603_v35 }
 0x273   : > { %612 = vst.msk [vmem:[%s921_s10] sm:$0x3] %vm451_vm15, %v611_v36 }
 0x277   : > { %v605_v33 = vld [vmem:[#allocation4] sm:$0x3] }
 0x278   : > { %607 = vrot.lane.b32.xlu0 %v605_v33, %s723_s16 }
 0x280   : > { %615 = vrot.lane.b32.xlu0 %v613_v34, %s723_s16 }
 0x2ea   : > { %v608_v37 = vpop.permute.xlu0 %607 }
 0x2eb   : > { %610 = vst.msk [vmem:[%s920_s9] sm:$0x3] %vm597_vm0, %v608_v37 }
 0x2f2   : > { %v616_v38 = vpop.permute.xlu0 %615 }
 0x2f3   : > { %618 = vst.msk [vmem:[%s921_s10] sm:$0x3] %vm597_vm0, %v616_v38 }
 0x2f4 PF: > { %s21_s13 = sadd.s32 1, %s713_s13  }
 0x2f5   : > { %p18_p5 = scmp.ge.s32.totalorder %s21_s13, 10  }
 0x2f7   :  { %20 = sbr.rel (!%p18_p5) target bundleno = 1 (0x1), region = 103 }

// kernel: seq2seq_forward.6
= control target key start
LH: loop header
LB: loop body
LE: loop exit
PB: predicated region body
PF: predicated region fallthrough
CT: control target
= control target key end

     0   :  { %s1247_s21 = smov 0   ;;  %s1429_s0 = inlined_call_operand.vmem [shape: f32[6,2,16], index: 0, kind: input, shape index: {}]   ;;  %s1430_s1 = inlined_call_operand.vmem [shape: f32[2,2,32], index: 1, kind: input, shape index: {}]   ;;  %s1431_s2 = inlined_call_operand.vmem [shape: f32[2,2,32], index: 2, kind: input, shape index: {}]   ;;  %s1432_s3 = inlined_call_operand.vmem [shape: f32[2,8,32], index: 3, kind: input, shape index: {}]   ;;  %s1433_s4 = inlined_call_operand.vmem [shape: f32[2,8], index: 4, kind: input, shape index: {}]   ;;  %s1434_s5 = inlined_call_operand.vmem [shape: f32[32,32], index: 5, kind: input, shape index: {}]   ;;  %s1435_s6 = inlined_call_operand.vmem [shape: f32[32,32], index: 6, kind: input, shape index: {}]   ;;  %s1436_s7 = inlined_call_operand.vmem [shape: f32[32,32], index: 7, kind: input, shape index: {}]   ;;  %s1437_s8 = inlined_call_operand.vmem [shape: f32[1,32], index: 8, kind: input, shape index: {}]   ;;  %s1438_s9 = inlined_call_operand.vmem [shape: f32[16,128], index: 9, kind: input, shape index: {}]   ;;  %s1439_s10 = inlined_call_operand.vmem [shape: f32[32,128], index: 10, kind: input, shape index: {}]   ;;  %s1440_s11 = inlined_call_operand.vmem [shape: f32[32,128], index: 11, kind: input, shape index: {}]   ;;  %s1441_s12 = inlined_call_operand.vmem [shape: f32[1,128], index: 12, kind: input, shape index: {}]   ;;  %s1442_s13 = inlined_call_operand.vmem [shape: f32[32,128], index: 13, kind: input, shape index: {}]   ;;  %s1443_s14 = inlined_call_operand.vmem [shape: f32[32,128], index: 14, kind: input, shape index: {}]   ;;  %s1444_s15 = inlined_call_operand.vmem [shape: f32[1,128], index: 15, kind: input, shape index: {}]   ;;  %s1445_s16 = inlined_call_operand.vmem [shape: f32[6,2,32], index: 16, kind: output, shape index: {}]  }
   0x1   :  { %1446 = sst [smem:[#allocation5_spill]] %s1429_s0 }
   0x2 LB: > { %s1083_s22 = sadd.s32 4294967295, %s1156_s21   ;;  %p1087_p0 = scmp.ge.s32.totalorder %s1156_s21, 1  ;;  %s1156_s21 = sphi %s1247_s21, %s26_s21  }
   0x3   : > { %p461_p1 = scmp.lt.s32.totalorder %s1156_s21, 7 }
   0x5   : > { %p462_p2 = pnand %p1087_p0, %p461_p1 }
   0x6   : > { %p509_p3 = scmp.lt.s32.totalorder (!%p462_p2), %s1083_s22, 5  ;;  %s1447_s27 = sld [smem:[#allocation5_spill]] (!%p462_p2) }
   0x7   : > { %465 = sbr.rel (%p462_p2) target bundleno = 1986 (0x7c2), region = 84  ;;  %p1090_p4 = scmp.ne.s32.totalorder (!%p462_p2), %s1083_s22, 0 }
   0xc   : > { %s510_s23 = scalar_select %p509_p3, %s1083_s22, 5 }
   0xd   : > { %520 = sbr.rel (%p1090_p4) target bundleno = 24 (0x18), region = 88 }
   0xe   : > { %s1088_s24 = sshll.u32 %s510_s23, 1 }
   0xf   : > { %s1258_s28 = scalar_lea.vmem %s1447_s27, %s1088_s24  ;;  %s1263_s0 = scalar_lea.vmem %s1445_s16, %s1088_s24 }
  0x12   : > { %v521_v0 = vld [vmem:[%s1430_s1] sm:$0x3]  ;;  %vm523_vm0 = vcmask 254976   ;;  %v522_v1 = vld [vmem:[%s1430_s1 + $0x2] sm:$0x3]  ;;  %v1158_v4 = vmov 0.0  }
  0x13   : > { %524 = vst.msk [vmem:[#allocation2] sm:$0x3] %vm523_vm0, %v521_v0  ;;  %v526_v2 = vld [vmem:[%s1431_s2] sm:$0x3]  ;;  %v527_v3 = vld [vmem:[%s1431_s2 + $0x2] sm:$0x3] }
  0x14   : > { %525 = vst.msk [vmem:[#allocation2 + $0x2] sm:$0x3] %vm523_vm0, %v522_v1 }
  0x15   : > { %528 = vst.msk [vmem:[#allocation3] sm:$0x3] %vm523_vm0, %v526_v2 }
  0x16   : > { %529 = vst.msk [vmem:[#allocation3 + $0x2] sm:$0x3] %vm523_vm0, %v527_v3 }
  0x17   : > { %530 = vst.msk [vmem:[#allocation4] sm:$0x3] %vm523_vm0, %v1158_v4 }
  0x18 PF: > { %v591_v5 = vld [vmem:[%s1440_s11 + $0x18] sm:$0xff]  ;;  %v590_v6 = vld [vmem:[%s1440_s11 + $0x10] sm:$0xff]  ;;  %v589_v9 = vld [vmem:[%s1440_s11 + $0x8] sm:$0xff]  ;;  %vm539_vm1 = vcmask 261120   ;;  %vm563_vm2 = vcmask 130048   ;;  %s1160_s26 = smov 32  }
  0x19   : > { %v538_v7 = vld [vmem:[%s1439_s10 + $0x18] sm:$0xff]  ;;  %607 = vmatpush.msra.mxu2 %v591_v5  ;;  %v537_v8 = vld [vmem:[%s1439_s10 + $0x10] sm:$0xff]  ;;  %v536_v10 = vld [vmem:[%s1439_s10 + $0x8] sm:$0xff]  ;;  %vm667_vm7 = vcmask 254976   ;;  %vm871_vm12 = vcmask 57344   ;;  %s1161_s30 = smov 96  }
  0x1a   : > { %555 = vmatpush.msra.mxu0 %v538_v7  ;;  %v534_v11 = vld [vmem:[%s1438_s9 + $0x8] sm:$0xff]  ;;  %v588_v12 = vld [vmem:[%s1440_s11] sm:$0xff]  ;;  %v683_v47 = vld [vmem:[%s1443_s14 + $0x18] sm:$0xff] }
  0x1b   : > { %608 = vmatpush.msra.mxu2 %v590_v6  ;;  %v533_v13 = vld [vmem:[%s1438_s9] sm:$0xff]  ;;  %581 = vmatpush.msra.mxu1 %v534_v11  ;;  %v682_v48 = vld [vmem:[%s1443_s14 + $0x10] sm:$0xff]  ;;  %v677_v49 = vld [vmem:[%s1442_s13 + $0x18] sm:$0xff] }
  0x1c   : > { %556 = vmatpush.msra.mxu0 %v537_v8  ;;  %v535_v14 = vld [vmem:[%s1439_s10] sm:$0xff]  ;;  %699 = vmatpush.msra.mxu3 %v683_v47  ;;  %v681_v50 = vld [vmem:[%s1443_s14 + $0x8] sm:$0xff]  ;;  %v676_v51 = vld [vmem:[%s1442_s13 + $0x10] sm:$0xff] }
  0x1d   : > { %609 = vmatpush.msra.mxu2 %v589_v9  ;;  %v587_v15 = vld [vmem:[#allocation2] sm:$0x3]  ;;  %582 = vmatpush.msra.mxu1 %v533_v13  ;;  %v621_v26 = vld [vmem:[#allocation3] sm:$0x3]  ;;  %v675_v52 = vld [vmem:[%s1442_s13 + $0x8] sm:$0xff] }
  0x1e   : > { %557 = vmatpush.msra.mxu0 %v536_v10  ;;  %v532_v16 = vld [vmem:[#allocation4] sm:$0x3]  ;;  %v531_v17 = vld [vmem:[%s1258_s28] sm:$0x3]  ;;  %s1159_s28 = smov 64   ;;  %700 = vmatpush.msra.mxu3 %v682_v48 }
  0x1f   : > { %610 = vmatpush.msra.mxu2 %v588_v12  ;;  %1092 = vmatmul.msk.f32.vlgmr.msra.gmra.mxu1 %vm563_vm2, %v531_v17  ;;  %v1121_v21 = vld [vmem:[%s1441_s12] ss:$0 sm:$0xff]  ;;  %v679_v54 = vld [vmem:[#allocation2 + $0x2] sm:$0x3]  ;;  %v735_v58 = vld [vmem:[#allocation3 + $0x2] sm:$0x3] }
  0x20   : > { %558 = vmatpush.msra.mxu0 %v535_v14  ;;  %1093 = vmatmul.msk.f32.vlgmr.msra.gmra.mxu2 %vm539_vm1, %v587_v15  ;;  %v680_v53 = vld [vmem:[%s1443_s14] sm:$0xff] }
  0x21   : > { %1091 = vmatmul.msk.f32.vlgmr.msra.gmra.mxu0 %vm539_vm1, %v532_v16  ;;  %721 = vmatpush.msrb.mxu1 %v677_v49  ;;  %v674_v55 = vld [vmem:[%s1442_s13] sm:$0xff] }
  0x22   : > { %701 = vmatpush.msra.mxu3 %v681_v50  ;;  %v1122_v61 = vld [vmem:[%s1444_s15] ss:$0 sm:$0xff] }
  0x23   : > { %722 = vmatpush.msrb.mxu1 %v676_v51 }
  0x24   : > { %702 = vmatpush.msra.mxu3 %v680_v53 }
  0x25   : > { %723 = vmatpush.msrb.mxu1 %v675_v52  ;;  %1095 = vmatmul.msk.f32.vlgmr.msra.gmra.mxu3 %vm539_vm1, %v679_v54 }
  0x27   : > { %724 = vmatpush.msrb.mxu1 %v674_v55 }
  0x9c   : > { %v584_v19 = vpop.f32.mrf.mxu1 }
  0x9e   : > { %v560_v18 = vpop.f32.mrf.mxu0 }
  0x9f   : > { %v585_v20 = vadd.f32 %v584_v19, %v560_v18 }
  0xa3   : > { %v612_v22 = vpop.f32.mrf.mxu2 }
  0xa4   : > { %v615_v23 = vadd.f32 %v612_v22, %v585_v20  ;;  %v792_v22 = vld [vmem:[%s1434_s5 + $0x18] sm:$0xff] }
  0xa5   : > { %807 = vmatpush.msrb.mxu0 %v792_v22 }
  0xa6   : > { %v620_v24 = vadd.f32 %v1121_v21, %v615_v23  ;;  %v791_v23 = vld [vmem:[%s1434_s5 + $0x10] sm:$0xff] }
  0xa7   : > { %808 = vmatpush.msrb.mxu0 %v791_v23 }
  0xa8   : > { %1124 = vtanh.f32 %v620_v24  ;;  %v1094_v27 = vmul.f32 -1.442695, %v620_v24  ;;  %v704_v60 = vpop.f32.mrf.mxu3  ;;  %v790_v24 = vld [vmem:[%s1434_s5 + $0x8] sm:$0xff] }
  0xa9   : > { %809 = vmatpush.msrb.mxu0 %v790_v24 }
  0xaa   : > { %1126 = vpow2.f32 %v1094_v27 }
  0xae   : > { %v1125_v25 = vpop.eup %1124 }
  0xaf   : > { %648 = vrot.lane.b32.xlu0 %v1125_v25, %s1159_s28  ;;  %v789_v25 = vld [vmem:[%s1434_s5] sm:$0xff] }
  0xb0   : > { %v1127_v28 = vpop.eup %1126  ;;  %810 = vmatpush.msrb.mxu0 %v789_v25  ;;  %v1123_v25 = vld [vmem:[%s1437_s8] ss:$0 sm:$0xff] }
  0xb1   : > { %v625_v29 = vadd.f32 1.0, %v1127_v28  ;;  %v788_v28 = vld [vmem:[%s1432_s3 + $0x8] sm:$0xff] }
  0xb2   : > { %1101 = vmatpush.xpose.msk.msrb.mxu3 %vm539_vm1, %v788_v28  ;;  %962 = vmatpush.msra.mxu0 %v788_v28 }
  0xb3   : > { %1128 = vrcp.f32 %v625_v29  ;;  %v637_v35 = vand.u32 2147483648, %v625_v29  ;;  %vm631_vm4 = vweird.f32 %v625_v29  ;;  %v635_v36 = vand.u32 2147483647, %v625_v29 }
  0xb5   : > { %v638_v38 = vor.u32 1.1754944e-38, %v637_v35  ;;  %vm636_vm6 = vcmp.eq.f32.partialorder %v635_v36, 8.507059e+37 }
  0xb7   : > { %643 = vrot.lane.b32.xlu0 %v621_v26, %s1160_s26 }
  0xb9   : > { %v1129_v30 = vpop.eup %1128 }
  0xba   : > { %v627_v31 = vmul.f32 %v1129_v30, %v625_v29  ;;  %vm632_vm3 = vweird.f32 %v1129_v30  ;;  %v787_v29 = vld [vmem:[%s1432_s3] sm:$0xff] }
  0xbb   : > { %vm633_vm5 = vmor %vm631_vm4, %vm632_vm3  ;;  %1099 = vmatpush.xpose.msk.msrb.mxu2 %vm539_vm1, %v787_v29  ;;  %939 = vmatpush.msra.mxu1 %v787_v29 }
  0xbc   : > { %v628_v32 = vsub.f32 1.0, %v627_v31  ;;  %v970_v31 = vld [vmem:[%s1435_s6 + $0x18] sm:$0xff] }
  0xbd   : > { %1014 = vmatpush.msra.mxu3 %v970_v31 }
  0xbe   : > { %v629_v33 = vmul.f32 %v1129_v30, %v628_v32  ;;  %v969_v32 = vld [vmem:[%s1435_s6 + $0x10] sm:$0xff] }
  0xbf   : > { %757 = vrot.lane.b32.xlu0 %v735_v58, %s1160_s26  ;;  %1015 = vmatpush.msra.mxu3 %v969_v32 }
  0xc0   : > { %v630_v34 = vadd.f32 %v1129_v30, %v629_v33  ;;  %v968_v33 = vld [vmem:[%s1435_s6 + $0x8] sm:$0xff] }
  0xc1   : > { %1016 = vmatpush.msra.mxu3 %v968_v33 }
  0xc2   : > { %v634_v37 = vsel %vm633_vm5, %v1129_v30, %v630_v34  ;;  %v967_v34 = vld [vmem:[%s1435_s6] sm:$0xff]  ;;  %vm920_vm5 = vcmask 64512  }
  0xc3   : > { %v639_v40 = vsel %vm636_vm6, %v638_v38, %v634_v37  ;;  %1017 = vmatpush.msra.mxu3 %v967_v34  ;;  %v817_v37 = vld [vmem:[%s1433_s4] sm:$0x3] }
  0xc4   : > { %v819_v38 = vrot.slane %v817_v37, 1 }
 0x121   : > { %v649_v39 = vpop.permute.xlu0 %648 }
 0x122   : > { %v651_v41 = vmul.f32 %v649_v39, %v639_v40 }
 0x124   : > { %653 = vrot.lane.b32.xlu1 %v651_v41, %s1160_s26 }
 0x129   : > { %v644_v42 = vpop.permute.xlu0 %643 }
 0x12a   : > { %v646_v43 = vmul.f32 %v644_v42, %v639_v40 }
 0x131   : > { %v758_v17 = vpop.permute.xlu0 %757 }
 0x196   : > { %v654_v44 = vpop.permute.xlu1 %653 }
 0x197   : > { %v1316_v45 = vadd.f32 %v654_v44, %v646_v43 }
 0x199   : > { %1130 = vtanh.f32 %v1316_v45 }
 0x19f   : > { %v1131_v46 = vpop.eup %1130 }
 0x1a0   : > { %659 = vrot.lane.b32.xlu1 %v1131_v46, %s1159_s28 }
 0x212   : > { %v660_v56 = vpop.permute.xlu1 %659 }
 0x213   : > { %v662_v57 = vmul.f32 %v660_v56, %v639_v40 }
 0x215   : > { %664 = vrot.lane.b32.xlu2 %v662_v57, %s1160_s26 }
 0x26f   : > { %v665_v59 = vpop.permute.xlu2 %664 }
 0x270   : > { %668 = vst.msk [vmem:[#allocation2] sm:$0x3] %vm667_vm7, %v665_v59  ;;  %1096 = vmatmul.msk.f32.vlgmr.msrb.gmra.mxu1 %vm539_vm1, %v665_v59 }
 0x2ed   : > { %v726_v62 = vpop.f32.mrf.mxu1 }
 0x2ee   : > { %v727_v63 = vadd.f32 %v726_v62, %v704_v60 }
 0x2f0   : > { %v733_v0 = vadd.f32 %v1122_v61, %v727_v63 }
 0x2f2   : > { %1132 = vtanh.f32 %v733_v0  ;;  %v1097_v2 = vmul.f32 -1.442695, %v733_v0 }
 0x2f4   : > { %1134 = vpow2.f32 %v1097_v2 }
 0x2f8   : > { %v1133_v1 = vpop.eup %1132 }
 0x2f9   : > { %762 = vrot.lane.b32.xlu2 %v1133_v1, %s1159_s28 }
 0x2fa   : > { %v1135_v3 = vpop.eup %1134 }
 0x2fb   : > { %v739_v4 = vadd.f32 1.0, %v1135_v3 }
 0x2fd   : > { %1136 = vrcp.f32 %v739_v4  ;;  %v751_v10 = vand.u32 2147483648, %v739_v4  ;;  %vm745_vm9 = vweird.f32 %v739_v4  ;;  %v749_v11 = vand.u32 2147483647, %v739_v4 }
 0x2ff   : > { %v752_v13 = vor.u32 1.1754944e-38, %v751_v10  ;;  %vm750_vm11 = vcmp.eq.f32.partialorder %v749_v11, 8.507059e+37 }
 0x303   : > { %v1137_v5 = vpop.eup %1136 }
 0x304   : > { %v741_v6 = vmul.f32 %v1137_v5, %v739_v4  ;;  %vm746_vm8 = vweird.f32 %v1137_v5 }
 0x305   : > { %vm747_vm10 = vmor %vm745_vm9, %vm746_vm8  ;;  %vm978_vm8 = vcmask 1041409  }
 0x306   : > { %v742_v7 = vsub.f32 1.0, %v741_v6 }
 0x308   : > { %v743_v8 = vmul.f32 %v1137_v5, %v742_v7 }
 0x30a   : > { %v744_v9 = vadd.f32 %v1137_v5, %v743_v8 }
 0x30c   : > { %v748_v12 = vsel %vm747_vm10, %v1137_v5, %v744_v9 }
 0x30d   : > { %v753_v14 = vsel %vm750_vm11, %v752_v13, %v748_v12 }
 0x30e   : > { %v760_v18 = vmul.f32 %v758_v17, %v753_v14 }
 0x353   : > { %v763_v15 = vpop.permute.xlu2 %762 }
 0x354   : > { %v765_v16 = vmul.f32 %v763_v15, %v753_v14 }
 0x356   : > { %767 = vrot.lane.b32.xlu1 %v765_v16, %s1160_s26 }
 0x3c8   : > { %v768_v19 = vpop.permute.xlu1 %767 }
 0x3c9   : > { %v1354_v20 = vadd.f32 %v768_v19, %v760_v18  ;;  %v973_v18 = vld [vmem:[%s1436_s7 + $0x10] sm:$0xff]  ;;  %v972_v19 = vld [vmem:[%s1436_s7 + $0x8] sm:$0xff] }
 0x3cb   : > { %1138 = vtanh.f32 %v1354_v20 }
 0x3d1   : > { %v1139_v21 = vpop.eup %1138 }
 0x3d2   : > { %773 = vrot.lane.b32.xlu2 %v1139_v21, %s1159_s28 }
 0x42c   : > { %v774_v26 = vpop.permute.xlu2 %773 }
 0x42d   : > { %v776_v27 = vmul.f32 %v774_v26, %v753_v14 }
 0x42f   : > { %778 = vrot.lane.b32.xlu0 %v776_v27, %s1160_s26 }
 0x4a1   : > { %v779_v30 = vpop.permute.xlu0 %778 }
 0x4a2   : > { %781 = vst.msk [vmem:[#allocation2 + $0x2] sm:$0x3] %vm667_vm7, %v779_v30  ;;  %1098 = vmatmul.msk.f32.vlgmr.msrb.gmra.mxu0 %vm539_vm1, %v779_v30 }
 0x51f   : > { %v812_v35 = vpop.f32.mrf.mxu0 }
 0x520   : > { %v816_v36 = vrot.slane %v812_v35, 1  ;;  %1100 = vmatmul.msk.f32.vlgmr.msrb.gmra.mxu2 %vm539_vm1, %v812_v35 }
 0x522   : > { %1102 = vmatmul.msk.f32.vlgmr.msrb.gmra.mxu3 %vm539_vm1, %v816_v36 }
 0x52a   : > { %1106 = vmatmul.msk.f32.vlgmr.msra.gmra.mxu3 %vm539_vm1, %v779_v30 }
 0x5a3   : > { %v843_v39 = vpop.f32.mrf.mxu2 }
 0x5a4   : > { %v844_v40 = vadd.f32 %v843_v39, %v817_v37 }
 0x5a5   : > { %v868_v41 = vpop.f32.mrf.mxu3 }
 0x5a6   : > { %v869_v42 = vadd.f32 %v868_v41, %v819_v38  ;;  %v872_v43 = vsel %vm871_vm12, %v844_v40, -inf }
 0x5a7   : > { %873 = vmax.xlane.f32.xlu2 %v872_v43 }
 0x5a8   : > { %v875_v44 = vsel %vm871_vm12, %v869_v42, -inf }
 0x5a9   : > { %876 = vmax.xlane.f32.xlu1 %v875_v44 }
 0x5ad   : > { %v1019_v26 = vpop.f32.mrf.mxu3 }
 0x5c2   : > { %670 = vrot.lane.b32.xlu1 %v1316_v45, %s1161_s30  ;;  %v974_v45 = vld [vmem:[%s1436_s7 + $0x18] sm:$0xff] }
 0x5c3   : > { %994 = vmatpush.msra.mxu2 %v974_v45 }
 0x5c5   : > { %995 = vmatpush.msra.mxu2 %v973_v18 }
 0x5c7   : > { %996 = vmatpush.msra.mxu2 %v972_v19 }
 0x61a   : > { %v874_v46 = vpop.xlane.xlu2 %873 }
 0x61b   : > { %v878_v47 = vsub.f32 %v844_v40, %v874_v46 }
 0x61c   : > { %v877_v48 = vpop.xlane.xlu1 %876 }
 0x61d   : > { %v880_v49 = vmul.f32 1.442695, %v878_v47  ;;  %v879_v50 = vsub.f32 %v869_v42, %v877_v48 }
 0x61f   : > { %1140 = vpow2.f32 %v880_v49  ;;  %v882_v51 = vmul.f32 1.442695, %v879_v50 }
 0x621   : > { %1142 = vpow2.f32 %v882_v51 }
 0x625   : > { %v1141_v52 = vpop.eup %1140 }
 0x626   : > { %v884_v53 = vsel %vm871_vm12, %v1141_v52, 0.0 }
 0x627   : > { %v1143_v54 = vpop.eup %1142  ;;  %885 = vadd.xlane.f32.xlu2 %v884_v53 }
 0x628   : > { %v887_v55 = vsel %vm871_vm12, %v1143_v54, 0.0 }
 0x629   : > { %888 = vadd.xlane.f32.xlu0 %v887_v55 }
 0x634   : > { %v671_v56 = vpop.permute.xlu1 %670 }
 0x635   : > { %673 = vst.msk [vmem:[#allocation3] sm:$0x3] %vm667_vm7, %v671_v56 }
 0x63f   : > { %783 = vrot.lane.b32.xlu2 %v1354_v20, %s1161_s30  ;;  %v971_v20 = vld [vmem:[%s1436_s7] sm:$0xff] }
 0x640   : > { %997 = vmatpush.msra.mxu2 %v971_v20 }
 0x69a   : > { %v886_v57 = vpop.xlane.xlu2 %885 }
 0x69b   : > { %1144 = vrcp.f32 %v886_v57  ;;  %v901_v1 = vand.u32 2147483648, %v886_v57  ;;  %v899_v3 = vand.u32 2147483647, %v886_v57  ;;  %vm895_vm14 = vweird.f32 %v886_v57 }
 0x69c   : > { %v889_v58 = vpop.xlane.xlu0 %888 }
 0x69d   : > { %1146 = vrcp.f32 %v889_v58  ;;  %v916_v5 = vand.u32 2147483648, %v889_v58  ;;  %v914_v8 = vand.u32 2147483647, %v889_v58  ;;  %v902_v9 = vor.u32 1.1754944e-38, %v901_v1 }
 0x69e   : > { %vm900_vm2 = vcmp.eq.f32.partialorder %v899_v3, 8.507059e+37  ;;  %vm910_vm3 = vweird.f32 %v889_v58 }
 0x69f   : > { %v917_v13 = vor.u32 1.1754944e-38, %v916_v5  ;;  %vm915_vm6 = vcmp.eq.f32.partialorder %v914_v8, 8.507059e+37 }
 0x6a1   : > { %v1145_v59 = vpop.eup %1144 }
 0x6a2   : > { %v891_v60 = vmul.f32 %v1145_v59, %v886_v57  ;;  %v784_v61 = vpop.permute.xlu2 %783  ;;  %vm896_vm13 = vweird.f32 %v1145_v59 }
 0x6a3   : > { %v1147_v62 = vpop.eup %1146  ;;  %786 = vst.msk [vmem:[#allocation3 + $0x2] sm:$0x3] %vm667_vm7, %v784_v61  ;;  %vm897_vm0 = vmor %vm895_vm14, %vm896_vm13 }
 0x6a4   : > { %v892_v63 = vsub.f32 1.0, %v891_v60  ;;  %v906_v0 = vmul.f32 %v1147_v62, %v889_v58  ;;  %vm911_vm15 = vweird.f32 %v1147_v62 }
 0x6a5   : > { %vm912_vm4 = vmor %vm910_vm3, %vm911_vm15 }
 0x6a6   : > { %v893_v2 = vmul.f32 %v1145_v59, %v892_v63  ;;  %v907_v4 = vsub.f32 1.0, %v906_v0 }
 0x6a8   : > { %v894_v6 = vadd.f32 %v1145_v59, %v893_v2  ;;  %v908_v7 = vmul.f32 %v1147_v62, %v907_v4 }
 0x6aa   : > { %v898_v10 = vsel %vm897_vm0, %v1145_v59, %v894_v6  ;;  %v909_v11 = vadd.f32 %v1147_v62, %v908_v7 }
 0x6ab   : > { %v903_v12 = vsel %vm900_vm2, %v902_v9, %v898_v10 }
 0x6ac   : > { %v913_v14 = vsel %vm912_vm4, %v1147_v62, %v909_v11  ;;  %v904_v15 = vmul.f32 %v1141_v52, %v903_v12 }
 0x6ad   : > { %v918_v16 = vsel %vm915_vm6, %v917_v13, %v913_v14 }
 0x6ae   : > { %v919_v17 = vmul.f32 %v1143_v54, %v918_v16  ;;  %1103 = vmatmul.msk.f32.vlgmr.msra.gmra.mxu1 %vm920_vm5, %v904_v15 }
 0x6b0   : > { %1104 = vmatmul.msk.f32.vlgmr.msra.gmra.mxu0 %vm920_vm5, %v919_v17 }
 0x72b   : > { %v941_v23 = vpop.f32.mrf.mxu1 }
 0x72d   : > { %v964_v21 = vpop.f32.mrf.mxu0 }
 0x72e   : > { %v977_v22 = vrot.slane %v964_v21, 7 }
 0x730   : > { %v979_v24 = vsel %vm978_vm8, %v977_v22, %v941_v23 }
 0x731   : > { %1105 = vmatmul.msk.f32.vlgmr.msra.gmra.mxu2 %vm539_vm1, %v979_v24 }
 0x7b4   : > { %v999_v27 = vpop.f32.mrf.mxu2 }
 0x7b5   : > { %v1020_v28 = vadd.f32 %v1019_v26, %v999_v27 }
 0x7b7   : > { %v1026_v29 = vadd.f32 %v1123_v25, %v1020_v28 }
 0x7b9   : > { %1148 = vtanh.f32 %v1026_v29 }
 0x7bf   : > { %v1149_v30 = vpop.eup %1148 }
 0x7c0   : > { %1028 = vst.msk [vmem:[#allocation4] sm:$0x3] %vm667_vm7, %v1149_v30 }
 0x7c1   : > { %1029 = vst.msk [vmem:[%s1263_s0] sm:$0x3] %vm667_vm7, %v1149_v30 }
 0x7c2 PF: > { %s26_s21 = sadd.s32 1, %s1156_s21  }
 0x7c3   : > { %p23_p5 = scmp.ge.s32.totalorder %s26_s21, 8  }
 0x7c5   :  { %25 = sbr.rel (!%p23_p5) target bundleno = 2 (0x2), region = 120 }

// kernel: seq2seq_forward.4
= control target key start
LH: loop header
LB: loop body
LE: loop exit
PB: predicated region body
PF: predicated region fallthrough
CT: control target
= control target key end

     0   :  { %s774_s13 = smov 0   ;;  %s896_s0 = inlined_call_operand.vmem [shape: f32[8,2,16], index: 0, kind: input, shape index: {}]   ;;  %s897_s1 = inlined_call_operand.vmem [shape: s32[2,1], index: 1, kind: input, shape index: {}]   ;;  %s898_s2 = inlined_call_operand.vmem [shape: f32[16,64], index: 2, kind: input, shape index: {}]   ;;  %s899_s3 = inlined_call_operand.vmem [shape: f32[16,64], index: 3, kind: input, shape index: {}]   ;;  %s900_s4 = inlined_call_operand.vmem [shape: f32[1,64], index: 4, kind: input, shape index: {}]   ;;  %s901_s5 = inlined_call_operand.vmem [shape: f32[16,64], index: 5, kind: input, shape index: {}]   ;;  %s902_s6 = inlined_call_operand.vmem [shape: f32[16,64], index: 6, kind: input, shape index: {}]   ;;  %s903_s7 = inlined_call_operand.vmem [shape: f32[1,64], index: 7, kind: input, shape index: {}]   ;;  %s904_s8 = inlined_call_operand.vmem [shape: f32[8,2,32], index: 8, kind: output, shape index: {0}]   ;;  %s905_s9 = inlined_call_operand.vmem [shape: f32[2,32], index: 9, kind: output, shape index: {1}]   ;;  %s906_s10 = inlined_call_operand.vmem [shape: f32[2,32], index: 10, kind: output, shape index: {2}]  }
   0x1 LB: > { %s780_s14 = sadd.s32 4294967295, %s708_s13   ;;  %p652_p0 = scmp.ge.s32.totalorder %s708_s13, 1  ;;  %s708_s13 = sphi %s774_s13, %s21_s13  }
   0x2   : > { %p292_p1 = scmp.lt.s32.totalorder %s708_s13, 9 }
   0x4   : > { %p293_p2 = pnand %p652_p0, %p292_p1 }
   0x5   : > { %p653_p3 = scmp.ne.s32.totalorder (!%p293_p2), %s780_s14, 0 }
   0x6   : > { %296 = sbr.rel (%p293_p2) target bundleno = 753 (0x2f1), region = 52 }
   0xb   : > { %323 = sbr.rel (%p653_p3) target bundleno = 21 (0x15), region = 56 }
  0x10   : > { %vm324_vm0 = vcmask 123904   ;;  %v710_v0 = vmov 0.0  }
  0x11   : > { %325 = vst.msk [vmem:[#allocation2] sm:$0x3] %vm324_vm0, %v710_v0 }
  0x12   : > { %326 = vst.msk [vmem:[#allocation3] sm:$0x3] %vm324_vm0, %v710_v0 }
  0x13   : > { %327 = vst.msk [vmem:[#allocation4] sm:$0x3] %vm324_vm0, %v710_v0 }
  0x14   : > { %328 = vst.msk [vmem:[#allocation5] sm:$0x3] %vm324_vm0, %v710_v0 }
  0x15 PF: > { %v339_v1 = vld [vmem:[%s899_s3 + $0x8] sm:$0xff]  ;;  %v338_v3 = vld [vmem:[%s899_s3] sm:$0xff]  ;;  %s654_s21 = sshll.u32 %s780_s14, 1  ;;  %s329_s22 = ssub.s32 7, %s780_s14  ;;  %vm340_vm1 = vcmask 130048   ;;  %v433_v25 = vstv %s780_s14  ;;  %v712_v26 = vmov 0  }
  0x16   : > { %v337_v2 = vld [vmem:[%s898_s2 + $0x8] sm:$0xff]  ;;  %358 = vmatpush.msra.mxu0 %v339_v1  ;;  %v336_v4 = vld [vmem:[%s898_s2] sm:$0xff]  ;;  %s332_s11 = scalar_lea.vmem %s896_s0, %s654_s21  ;;  %s812_s12 = sshll.u32 %s329_s22, 1  ;;  %682 = vset.pattern.permute.xlu1 %v712_v26  ;;  %vm448_vm14 = vcmask 123904   ;;  %vm592_vm15 = vcmask 255104  }
  0x17   : > { %381 = vmatpush.msra.mxu1 %v337_v2  ;;  %v471_v5 = vld [vmem:[%s902_s6 + $0x8] sm:$0xff]  ;;  %v333_v8 = vld [vmem:[%s332_s11] sm:$0x3]  ;;  %s464_s19 = scalar_lea.vmem %s896_s0, %s812_s12  ;;  %s711_s24 = smov 16   ;;  %683 = vset.pattern.permute.xlu0 %v712_v26 }
  0x18   : > { %v469_v6 = vld [vmem:[%s901_s5 + $0x8] sm:$0xff]  ;;  %489 = vmatpush.msra.mxu2 %v471_v5  ;;  %v334_v7 = vld [vmem:[#allocation2] sm:$0x3]  ;;  %359 = vmatpush.msra.mxu0 %v338_v3  ;;  %s713_s11 = smov 96   ;;  %s714_s15 = smov 48  }
  0x19   : > { %512 = vmatpush.msra.mxu3 %v469_v6  ;;  %v470_v9 = vld [vmem:[%s902_s6] sm:$0xff]  ;;  %382 = vmatpush.msra.mxu1 %v336_v4  ;;  %v564_v6 = vstv %s329_s22  ;;  %s715_s16 = smov 32   ;;  %s716_s17 = smov 112  }
  0x1a   : > { %v468_v10 = vld [vmem:[%s901_s5] sm:$0xff]  ;;  %655 = vmatmul.msk.f32.vlgmr.msra.gmra.mxu0 %vm340_vm1, %v334_v7  ;;  %656 = vmatmul.msk.f32.vlgmr.msra.gmra.mxu1 %vm340_vm1, %v333_v8  ;;  %s717_s22 = smov 80   ;;  %s461_s20 = scalar_lea.vmem %s904_s8, %s654_s21 }
  0x1b   : > { %v824_v11 = vld [vmem:[#allocation4] sm:$0x3]  ;;  %v465_v12 = vld [vmem:[%s464_s19] sm:$0x3]  ;;  %v335_v13 = vld [vmem:[#allocation3] sm:$0x3]  ;;  %490 = vmatpush.msra.mxu2 %v470_v9  ;;  %513 = vmatpush.msra.mxu3 %v468_v10  ;;  %s591_s25 = scalar_lea.vmem %s904_s8, %s812_s12 }
  0x1c   : > { %659 = vmatmul.msk.f32.vlgmr.msra.gmra.mxu2 %vm340_vm1, %v824_v11  ;;  %660 = vmatmul.msk.f32.vlgmr.msra.gmra.mxu3 %vm340_vm1, %v465_v12  ;;  %v467_v14 = vld [vmem:[#allocation5] sm:$0x3]  ;;  %v684_v15 = vld [vmem:[%s900_s4] ss:$0 sm:$0xff]  ;;  %p662_p4 = scmp.ne.s32.totalorder %s780_s14, 7 }
  0x1d   : > { %413 = vrot.lane.b32.xlu1 %v335_v13, %s711_s24  ;;  %v685_v20 = vld [vmem:[%s903_s7] ss:$0 sm:$0xff]  ;;  %s718_s26 = smov (!%p662_p4), 16  }
  0x1e   : > { %v842_v24 = vld [vmem:[%s897_s1] sm:$0x3] }
  0x1f   : > { %vm434_vm2 = vcmp.gt.s32.totalorder %v842_v24, %v433_v25  ;;  %vm565_vm11 = vcmp.gt.s32.totalorder %v842_v24, %v564_v6 }
  0x20   : > { %v435_v29 = vsel %vm434_vm2, 1, %v712_v26 }
  0x25   : > { %544 = vrot.lane.b32.xlu1 %v467_v14, %s711_s24 }
  0x2d   : > { %437 = vperm.xlu1 %682, %v435_v29  }
  0x35   : > { %440 = vrot.lane.b32.xlu1 %v334_v7, %s714_s15  ;;  %v566_v7 = vsel %vm565_vm11, 1, %v712_v26 }
  0x8f   : > { %v414_v61 = vpop.permute.xlu1 %413 }
  0x97   : > { %v361_v16 = vpop.f32.mrf.mxu0  ;;  %v384_v17 = vpop.f32.mrf.mxu1 }
  0x98   : > { %v385_v18 = vadd.f32 %v384_v17, %v361_v16  ;;  %v545_v1 = vpop.permute.xlu1 %544 }
  0x9a   : > { %v391_v19 = vadd.f32 %v684_v15, %v385_v18 }
  0x9c   : > { %686 = vtanh.f32 %v391_v19  ;;  %v657_v31 = vmul.f32 -1.442695, %v391_v19 }
  0x9f   : > { %v492_v21 = vpop.f32.mrf.mxu2  ;;  %v515_v22 = vpop.f32.mrf.mxu3 }
  0xa0   : > { %v516_v23 = vadd.f32 %v515_v22, %v492_v21  ;;  %v438_v9 = vpop.permute.xlu1 %437 }
  0xa1   : > { %vm439_vm12 = vcmp.eq.s32.totalorder %v438_v9, 1 }
  0xa2   : > { %v687_v27 = vpop.eup %686  ;;  %v522_v28 = vadd.f32 %v685_v20, %v516_v23 }
  0xa3   : > { %418 = vrot.lane.b32.xlu0 %v687_v27, %s713_s11 }
  0xa4   : > { %688 = vtanh.f32 %v522_v28  ;;  %v661_v32 = vmul.f32 -1.442695, %v522_v28 }
  0xa5   : > { %690 = vpow2.f32 %v657_v31 }
  0xa6   : > { %692 = vpow2.f32 %v661_v32 }
  0xa8   : > { %v441_v14 = vpop.permute.xlu1 %440 }
  0xaa   : > { %v689_v30 = vpop.eup %688 }
  0xab   : > { %549 = vrot.lane.b32.xlu0 %v689_v30, %s713_s11  ;;  %v691_v33 = vpop.eup %690 }
  0xac   : > { %v395_v34 = vadd.f32 1.0, %v691_v33  ;;  %v693_v35 = vpop.eup %692 }
  0xad   : > { %v526_v36 = vadd.f32 1.0, %v693_v35 }
  0xae   : > { %694 = vrcp.f32 %v395_v34  ;;  %v407_v45 = vand.u32 2147483648, %v395_v34  ;;  %vm401_vm4 = vweird.f32 %v395_v34  ;;  %v405_v46 = vand.u32 2147483647, %v395_v34 }
  0xaf   : > { %696 = vrcp.f32 %v526_v36  ;;  %vm532_vm7 = vweird.f32 %v526_v36  ;;  %v538_v51 = vand.u32 2147483648, %v526_v36  ;;  %v536_v54 = vand.u32 2147483647, %v526_v36 }
  0xb0   : > { %v408_v49 = vor.u32 1.1754944e-38, %v407_v45  ;;  %vm406_vm6 = vcmp.eq.f32.partialorder %v405_v46, 8.507059e+37 }
  0xb1   : > { %v539_v56 = vor.u32 1.1754944e-38, %v538_v51  ;;  %vm537_vm10 = vcmp.eq.f32.partialorder %v536_v54, 8.507059e+37 }
  0xb4   : > { %v695_v37 = vpop.eup %694 }
  0xb5   : > { %v397_v38 = vmul.f32 %v695_v37, %v395_v34  ;;  %v697_v40 = vpop.eup %696  ;;  %vm402_vm3 = vweird.f32 %v695_v37 }
  0xb6   : > { %v528_v42 = vmul.f32 %v697_v40, %v526_v36  ;;  %vm403_vm5 = vmor %vm401_vm4, %vm402_vm3  ;;  %vm533_vm8 = vweird.f32 %v697_v40 }
  0xb7   : > { %v398_v39 = vsub.f32 1.0, %v397_v38  ;;  %vm534_vm9 = vmor %vm532_vm7, %vm533_vm8 }
  0xb8   : > { %v529_v44 = vsub.f32 1.0, %v528_v42 }
  0xb9   : > { %v399_v41 = vmul.f32 %v695_v37, %v398_v39 }
  0xba   : > { %v530_v48 = vmul.f32 %v697_v40, %v529_v44 }
  0xbb   : > { %v400_v43 = vadd.f32 %v695_v37, %v399_v41 }
  0xbc   : > { %v531_v53 = vadd.f32 %v697_v40, %v530_v48 }
  0xbd   : > { %v404_v47 = vsel %vm403_vm5, %v695_v37, %v400_v43 }
  0xbe   : > { %v409_v50 = vsel %vm406_vm6, %v408_v49, %v404_v47  ;;  %v535_v57 = vsel %vm534_vm9, %v697_v40, %v531_v53 }
  0xbf   : > { %v540_v58 = vsel %vm537_vm10, %v539_v56, %v535_v57  ;;  %v416_v62 = vmul.f32 %v414_v61, %v409_v50 }
  0xc0   : > { %v547_v2 = vmul.f32 %v545_v1, %v540_v58 }
 0x115   : > { %v419_v52 = vpop.permute.xlu0 %418 }
 0x116   : > { %v421_v55 = vmul.f32 %v419_v52, %v409_v50 }
 0x118   : > { %423 = vrot.lane.b32.xlu2 %v421_v55, %s711_s24 }
 0x11d   : > { %v550_v59 = vpop.permute.xlu0 %549 }
 0x11e   : > { %v552_v60 = vmul.f32 %v550_v59, %v540_v58 }
 0x120   : > { %554 = vrot.lane.b32.xlu2 %v552_v60, %s711_s24 }
 0x172   : > { %v424_v63 = vpop.permute.xlu2 %423 }
 0x173   : > { %v426_v0 = vadd.f32 %v424_v63, %v416_v62 }
 0x175   : > { %698 = vtanh.f32 %v426_v0  ;;  %v450_v10 = vsel %vm439_vm12, %v426_v0, %v414_v61 }
 0x17a   : > { %v555_v3 = vpop.permute.xlu2 %554 }
 0x17b   : > { %v699_v4 = vpop.eup %698  ;;  %v557_v5 = vadd.f32 %v555_v3, %v547_v2 }
 0x17c   : > { %429 = vrot.lane.b32.xlu0 %v699_v4, %s715_s16 }
 0x17d   : > { %700 = vtanh.f32 %v557_v5 }
 0x183   : > { %v701_v8 = vpop.eup %700 }
 0x184   : > { %568 = vperm.xlu0 %683, %v566_v7   ;;  %560 = vrot.lane.b32.xlu2 %v701_v8, %s715_s16 }
 0x18c   : > { %452 = vrot.lane.b32.xlu0 %v450_v10, %s716_s17  ;;  %571 = vrot.lane.b32.xlu2 %v824_v11, %s714_s15 }
 0x1de   : > { %v561_v12 = vpop.permute.xlu2 %560 }
 0x1df   : > { %v563_v19 = vmul.f32 %v561_v12, %v540_v58 }
 0x1e6   : > { %v572_v18 = vpop.permute.xlu2 %571 }
 0x1ee   : > { %v430_v13 = vpop.permute.xlu0 %429 }
 0x1ef   : > { %v432_v15 = vmul.f32 %v430_v13, %v409_v50 }
 0x1f1   : > { %v456_v16 = vsel %vm439_vm12, %v432_v15, 0.0  ;;  %v443_v17 = vsel %vm439_vm12, %v432_v15, %v441_v14 }
 0x1f2   : > { %458 = vrot.lane.b32.xlu1 %v456_v16, %s717_s22  ;;  %445 = vrot.lane.b32.xlu2 %v443_v17, %s717_s22 }
 0x1f6   : > { %v569_v20 = vpop.permute.xlu0 %568 }
 0x1f7   : > { %vm570_vm13 = vcmp.eq.s32.totalorder %v569_v20, 1 }
 0x1f8   : > { %v586_v21 = vsel %vm570_vm13, %v563_v19, 0.0  ;;  %v580_v22 = vsel %vm570_vm13, %v557_v5, %v545_v1  ;;  %v574_v23 = vsel %vm570_vm13, %v563_v19, %v572_v18 }
 0x1f9   : > { %588 = vrot.lane.b32.xlu0 %v586_v21, %s713_s11 }
 0x1fa   : > { %582 = vrot.lane.b32.xlu2 %v580_v22, %s716_s17  ;;  %576 = vrot.lane.b32.xlu1 %v574_v23, %s717_s22 }
 0x1fe   : > { %v453_v11 = vpop.permute.xlu0 %452 }
 0x1ff   : > { %455 = vst.msk [vmem:[#allocation3] sm:$0x3] %vm448_vm14, %v453_v11 }
 0x24c   : > { %v446_v24 = vpop.permute.xlu2 %445 }
 0x24d   : > { %449 = vst.msk [vmem:[#allocation2] sm:$0x3] %vm448_vm14, %v446_v24 }
 0x254   : > { %v583_v25 = vpop.permute.xlu2 %582 }
 0x255   : > { %585 = vst.msk [vmem:[#allocation5] sm:$0x3] %vm448_vm14, %v583_v25 }
 0x264   : > { %v459_v26 = vpop.permute.xlu1 %458 }
 0x265   : > { %462 = vst.msk [vmem:[%s461_s20] sm:$0x3] %vm448_vm14, %v459_v26 }
 0x269   : > { %597 = sbr.rel (%p662_p4) target bundleno = 753 (0x2f1), region = 60 }
 0x26b   : > { %v589_v27 = vpop.permute.xlu0 %588 }
 0x26c   : > { %593 = vst.msk [vmem:[%s591_s25] sm:$0x3] %vm592_vm15, %v589_v27  ;;  %v577_v28 = vpop.permute.xlu1 %576 }
 0x26d   : > { %579 = vst.msk [vmem:[#allocation4] sm:$0x3] %vm448_vm14, %v577_v28 }
 0x26e   : > { %v608_v30 = vld [vmem:[#allocation5] sm:$0x3]  ;;  %v598_v31 = vld [vmem:[#allocation2] sm:$0x3]  ;;  %v606_v32 = vld [vmem:[#allocation3] sm:$0x3] }
 0x26f   : > { %599 = vst.msk [vmem:[%s905_s9] sm:$0x3] %vm448_vm14, %v598_v31 }
 0x270   : > { %607 = vst.msk [vmem:[%s906_s10] sm:$0x3] %vm448_vm14, %v606_v32 }
 0x274   : > { %v600_v29 = vld [vmem:[#allocation4] sm:$0x3] }
 0x275   : > { %602 = vrot.lane.b32.xlu0 %v600_v29, %s718_s26 }
 0x27d   : > { %610 = vrot.lane.b32.xlu0 %v608_v30, %s718_s26 }
 0x2e7   : > { %v603_v33 = vpop.permute.xlu0 %602 }
 0x2e8   : > { %605 = vst.msk [vmem:[%s905_s9] sm:$0x3] %vm592_vm15, %v603_v33 }
 0x2ef   : > { %v611_v34 = vpop.permute.xlu0 %610 }
 0x2f0   : > { %613 = vst.msk [vmem:[%s906_s10] sm:$0x3] %vm592_vm15, %v611_v34 }
 0x2f1 PF: > { %s21_s13 = sadd.s32 1, %s708_s13  }
 0x2f2   : > { %p18_p5 = scmp.ge.s32.totalorder %s21_s13, 10  }
 0x2f4   :  { %20 = sbr.rel (!%p18_p5) target bundleno = 1 (0x1), region = 103 }

</bundles_post_ra>
